<compile_context>
chip_gen: v6e
topology: v6e:2x2x1
jax: 0.10.0
libtpu: 0.0.40
codegen_flags: <defaults>
</compile_context>

<pallas_src>
import jax
import jax.numpy as jnp
from jax.experimental import pallas as pl
from jax.experimental.pallas import tpu as pltpu


def _clique_gconv_kernel(a_ref, x_k_ref, x_self_ref, dinv_ref,
                         w_self_ref, w_nbr_ref, b_ref, o_ref, acc_ref):
    k = pl.program_id(1)

    @pl.when(k == 0)
    def _():
        acc_ref[...] = jnp.zeros_like(acc_ref)

    # Accumulate the neighbor sum for this row tile: A[i-tile, k-slab] @ X[k-slab]
    # (bf16 operands on the MXU, f32 accumulation in VMEM scratch).
    acc_ref[...] += jnp.dot(a_ref[...], x_k_ref[...],
                            preferred_element_type=jnp.float32)

    @pl.when(k == pl.num_programs(1) - 1)
    def _():
        x_nbr = acc_ref[...] * dinv_ref[...]          # mean aggregation, f32 [tm, C_in]
        # theta(concat([X, X_nbr])) == X @ W_self + X_nbr @ W_nbr + b
        y = jnp.dot(x_self_ref[...], w_self_ref[...],
                    preferred_element_type=jnp.float32)
        y = y + jnp.dot(x_nbr.astype(jnp.bfloat16), w_nbr_ref[...],
                        preferred_element_type=jnp.float32)
        y = y + b_ref[...]                            # [1, c_pad] broadcast over rows
        # ReLU; dropout is identity in eval mode.
        # TODO(synk): training-mode dropout (pltpu.prng_random_bits mask) not applied here.
        o_ref[...] = jnp.maximum(y, 0.0).astype(o_ref.dtype)


def _pick_config(N):
    """Generation-aware tile sizes / buffering / VMEM limit."""
    try:
        vmem_cap = int(pltpu.get_tpu_info().vmem_capacity_bytes)
    except Exception:
        vmem_cap = 64 * 1024 * 1024                    # conservative (v7x-sized) fallback
    big_vmem = vmem_cap >= 100 * 1024 * 1024           # v5e/v6e: 128 MiB; v7x: 64 MiB

    tm = min(512 if big_vmem else 256, N)
    tk_target = 8192

    # Contraction (K) tiles must cover N exactly: a partial K tail would fold OOB garbage
    # into the accumulator.  Row-tile tails are safe (masked output write discards them).
    if N <= tk_target or N % 128 != 0:
        tk = N
    else:
        tk = 128
        for cand in range(tk_target, 127, -128):
            if N % cand == 0:
                tk = cand
                break

    # v7x has 2 TensorCores: keep >= 4 row tiles so the "parallel" axis balances.
    if not big_vmem:
        while tm >= 256 and tm % 16 == 0 and pl.cdiv(N, tm) < 4:
            tm //= 2

    a_bufs = 3 if big_vmem else 2                      # deeper A stream on 128 MiB parts
    vmem_limit = (100 if big_vmem else 48) * 1024 * 1024
    return tm, tk, a_bufs, vmem_limit


def _build_call(N, C_in, c_pad, tm, tk, a_bufs, vmem_limit, out_dtype):
    grid = (pl.cdiv(N, tm), pl.cdiv(N, tk))
    n_i = grid[0]

    a_kwargs = {}
    if a_bufs != 2:
        a_kwargs["pipeline_mode"] = pl.Buffered(a_bufs)

    cost = pl.CostEstimate(
        flops=2 * N * N * C_in + 2 * N * (2 * C_in) * c_pad,
        transcendentals=0,
        bytes_accessed=(2 * N * N                      # A (bf16), dominant stream
                        + 2 * N * C_in * (n_i + 1)     # X K-slabs re-read per row tile + self
                        + 4 * N                        # deg_inv
                        + 2 * 2 * C_in * c_pad + 4 * c_pad
                        + 4 * N * c_pad))              # f32 lane-padded output

    return pl.pallas_call(
        _clique_gconv_kernel,
        out_shape=jax.ShapeDtypeStruct((N, c_pad), out_dtype),
        grid_spec=pltpu.PrefetchScalarGridSpec(
            num_scalar_prefetch=0,
            grid=grid,
            in_specs=[
                pl.BlockSpec((tm, tk), lambda i, k: (i, k), **a_kwargs),  # A tile (stream)
                pl.BlockSpec((tk, C_in), lambda i, k: (k, 0)),            # X K-slab
                pl.BlockSpec((tm, C_in), lambda i, k: (i, 0)),            # X self tile (per i)
                pl.BlockSpec((tm, 1), lambda i, k: (i, 0)),               # deg_inv (per i)
                pl.BlockSpec((C_in, c_pad), lambda i, k: (0, 0)),         # W_self (resident)
                pl.BlockSpec((C_in, c_pad), lambda i, k: (0, 0)),         # W_nbr  (resident)
                pl.BlockSpec((1, c_pad), lambda i, k: (0, 0)),            # bias   (resident)
            ],
            out_specs=pl.BlockSpec((tm, c_pad), lambda i, k: (i, 0)),
            scratch_shapes=[pltpu.VMEM((tm, C_in), jnp.float32)],         # A@X accumulator
        ),
        compiler_params=pltpu.CompilerParams(
            dimension_semantics=("parallel", "arbitrary"),
            vmem_limit_bytes=vmem_limit,
        ),
        cost_estimate=cost,
    )


def clique_graphconv(A, X, W, b):
    """A: [N, N] dense adjacency, X: [N, C_in], W: [2*C_in, C_out] (= theta.weight.T),
    b: [C_out]. Returns ReLU(concat([X, mean_nbr(X)]) @ W + b) as float32 [N, C_out]."""
    N, C_in = X.shape
    C_out = W.shape[1]
    assert W.shape[0] == 2 * C_in
    assert A.shape == (N, N)

    tm, tk, a_bufs, vmem_limit = _pick_config(N)

    # Degree inverse computed once in XLA (exact f32), streamed once per row tile.
    deg_inv = (1.0 / jnp.maximum(
        jnp.sum(A.astype(jnp.float32), axis=-1, keepdims=True), 1.0)).astype(jnp.float32)

    # bf16 operands for the MXU (A is 0/1 -> exact in bf16; halves HBM traffic on A).
    A_bf = A.astype(jnp.bfloat16)
    X_bf = X.astype(jnp.bfloat16)

    # Lane-dense output: pad C_out to a multiple of 128 with zero weight/bias columns
    # (ReLU(0) == 0), slice back after.  Theta weights in bf16 (tiny K = C_in dots).
    c_pad = ((C_out + 127) // 128) * 128
    W_pad = jnp.pad(W.astype(jnp.float32), ((0, 0), (0, c_pad - C_out)))
    W_self = W_pad[:C_in, :].astype(jnp.bfloat16)
    W_nbr = W_pad[C_in:, :].astype(jnp.bfloat16)
    b_pad = jnp.pad(b.astype(jnp.float32), (0, c_pad - C_out)).reshape(1, c_pad)

    args = (A_bf, X_bf, X_bf, deg_inv, W_self, W_nbr, b_pad)
    try:
        out_padded = _build_call(N, C_in, c_pad, tm, tk, a_bufs, vmem_limit,
                                 jnp.float32)(*args)
    except Exception:
        # Fallback to plain double-buffering if deeper pipelining is unsupported here.
        out_padded = _build_call(N, C_in, c_pad, tm, tk, 2, vmem_limit,
                                 jnp.float32)(*args)

    # TODO(synk): the padded zero columns + this slice cost an extra N*c_pad f32 HBM pass;
    # return the padded slab (or a bf16 output) directly to the consumer if that matters.
    return out_padded[:, :C_out]


def reference(A, X, W, b):
    # Same bf16 input/weight quantization as the kernel, then f32 math at HIGHEST precision.
    Aq = A.astype(jnp.bfloat16).astype(jnp.float32)
    Xq = X.astype(jnp.bfloat16).astype(jnp.float32)
    Wq = W.astype(jnp.bfloat16).astype(jnp.float32)
    deg = jnp.maximum(jnp.sum(A.astype(jnp.float32), axis=-1, keepdims=True), 1.0)
    x_nbr = jnp.dot(Aq, Xq, precision=jax.lax.Precision.HIGHEST) / deg
    x_cat = jnp.concatenate([Xq, x_nbr], axis=1)
    y = jnp.dot(x_cat, Wq, precision=jax.lax.Precision.HIGHEST) + b
    return jnp.maximum(y, 0.0)


if __name__ == "__main__":
    key = jax.random.PRNGKey(0)
    k_a, k_x, k_w, k_b = jax.random.split(key, 4)

    N = 256       # number of nodes
    C_in = 16     # in_channels
    C_out = 32    # out_channels

    # deterministic random symmetric 0/1 adjacency, zero diagonal
    A_rand = jax.random.bernoulli(k_a, 0.1, (N, N))
    A = jnp.logical_or(A_rand, A_rand.T)
    A = jnp.where(jnp.eye(N, dtype=bool), False, A).astype(jnp.float32)

    X = jax.random.normal(k_x, (N, C_in), dtype=jnp.float32)

    # theta: nn.Linear(2*C_in, C_out, bias=True) -> weight [C_out, 2*C_in]; W = weight.T
    W = (jax.random.normal(k_w, (2 * C_in, C_out), dtype=jnp.float32)
         * (1.0 / jnp.sqrt(2.0 * C_in)))
    b = jax.random.normal(k_b, (C_out,), dtype=jnp.float32) * 0.01

    out = clique_graphconv(A, X, W, b)
    out = jax.block_until_ready(out)
    ref = reference(A, X, W, b)

    assert out.shape == (N, C_out)
    # tolerance covers bf16 MXU passes vs the HIGHEST-precision f32 reference
    assert jnp.allclose(out, ref, atol=2e-2, rtol=2e-2), (
        f"mismatch vs reference: max abs err = {jnp.max(jnp.abs(out - ref))}")

    print("KERNEL_OK")
</pallas_src>

<mosaic_0001>
module attributes {stable_mosaic.version = 11 : i64} {
  func.func @_clique_gconv_kernel(%arg0: i32, %arg1: i32, %arg2: memref<128x256xbf16, #tpu.memory_space<vmem>>, %arg3: memref<256x16xbf16, #tpu.memory_space<vmem>>, %arg4: memref<128x16xbf16, #tpu.memory_space<vmem>>, %arg5: memref<128x1xf32, #tpu.memory_space<vmem>>, %arg6: memref<16x128xbf16, #tpu.memory_space<vmem>>, %arg7: memref<16x128xbf16, #tpu.memory_space<vmem>>, %arg8: memref<1x128xf32, #tpu.memory_space<vmem>>, %arg9: memref<128x128xf32, #tpu.memory_space<vmem>>, %arg10: memref<128x16xf32, #tpu.memory_space<vmem>>) attributes {dimension_semantics = [#tpu.dimension_semantics<parallel>, #tpu.dimension_semantics<arbitrary>], iteration_bounds = array<i64: 2, 1>, scalar_prefetch = 0 : i64, scratch_operands = 1 : i64, tpu.core_type = #tpu.core_type<tc>, window_params = [{transform_indices = @transform_0, window_bounds = array<i64: 128, 256>}, {transform_indices = @transform_1, window_bounds = array<i64: 256, 16>}, {transform_indices = @transform_2, window_bounds = array<i64: 128, 16>}, {transform_indices = @transform_3, window_bounds = array<i64: 128, 1>}, {pipeline_mode = #tpu.pipeline_mode<synchronous>, transform_indices = @transform_4, window_bounds = array<i64: 16, 128>}, {pipeline_mode = #tpu.pipeline_mode<synchronous>, transform_indices = @transform_5, window_bounds = array<i64: 16, 128>}, {pipeline_mode = #tpu.pipeline_mode<synchronous>, transform_indices = @transform_6, window_bounds = array<i64: 1, 128>}, {transform_indices = @transform_7, window_bounds = array<i64: 128, 128>}]} {
    %c0_i32 = arith.constant 0 : i32
    %0 = arith.cmpi eq, %arg1, %c0_i32 : i32
    %1 = arith.extui %0 : i1 to i32
    %c0_i32_0 = arith.constant 0 : i32
    %2 = arith.cmpi ne, %1, %c0_i32_0 : i32
    scf.if %2 {
      %cst_10 = arith.constant 0.000000e+00 : f32
      %12 = vector.broadcast %cst_10 : f32 to vector<128x16xf32>
      %c0_11 = arith.constant 0 : index
      %c0_12 = arith.constant 0 : index
      %13 = vector.load %arg10[%c0_11, %c0_12] : memref<128x16xf32, #tpu.memory_space<vmem>>, vector<128x16xf32>
      tpu.vector_store %arg10[%c0_11, %c0_12], %12 {strides = array<i32>} : memref<128x16xf32, #tpu.memory_space<vmem>>, vector<128x16xf32>,
    } else {
    }
    %c0 = arith.constant 0 : index
    %c0_1 = arith.constant 0 : index
    %3 = vector.load %arg10[%c0, %c0_1] : memref<128x16xf32, #tpu.memory_space<vmem>>, vector<128x16xf32>
    %c0_2 = arith.constant 0 : index
    %c0_3 = arith.constant 0 : index
    %4 = vector.load %arg2[%c0_2, %c0_3] : memref<128x256xbf16, #tpu.memory_space<vmem>>, vector<128x256xbf16>
    %c0_4 = arith.constant 0 : index
    %c0_5 = arith.constant 0 : index
    %5 = vector.load %arg3[%c0_4, %c0_5] : memref<256x16xbf16, #tpu.memory_space<vmem>>, vector<256x16xbf16>
    %cst = arith.constant dense<0.000000e+00> : vector<128x16xf32>
    %6 = tpu.matmul %4, %5, %cst {dimension_numbers = #tpu.dot_dimension_numbers<[1], [0], [0], [1], [0, 0, 1, 1], [], []>} : vector<128x256xbf16>, vector<256x16xbf16>, vector<128x16xf32> -> vector<128x16xf32>
    %7 = arith.addf %3, %6 : vector<128x16xf32>
    %c0_6 = arith.constant 0 : index
    %c0_7 = arith.constant 0 : index
    %8 = vector.load %arg10[%c0_6, %c0_7] : memref<128x16xf32, #tpu.memory_space<vmem>>, vector<128x16xf32>
    tpu.vector_store %arg10[%c0_6, %c0_7], %7 {strides = array<i32>} : memref<128x16xf32, #tpu.memory_space<vmem>>, vector<128x16xf32>,
    %c0_i32_8 = arith.constant 0 : i32
    %9 = arith.cmpi eq, %arg1, %c0_i32_8 : i32
    %10 = arith.extui %9 : i1 to i32
    %c0_i32_9 = arith.constant 0 : i32
    %11 = arith.cmpi ne, %10, %c0_i32_9 : i32
    scf.if %11 {
      %c0_10 = arith.constant 0 : index
      %c0_11 = arith.constant 0 : index
      %12 = vector.load %arg10[%c0_10, %c0_11] : memref<128x16xf32, #tpu.memory_space<vmem>>, vector<128x16xf32>
      %c0_12 = arith.constant 0 : index
      %c0_13 = arith.constant 0 : index
      %13 = vector.load %arg5[%c0_12, %c0_13] : memref<128x1xf32, #tpu.memory_space<vmem>>, vector<128x1xf32>
      %14 = vector.broadcast %13 : vector<128x1xf32> to vector<128x16xf32>
      %15 = arith.mulf %12, %14 : vector<128x16xf32>
      %c0_14 = arith.constant 0 : index
      %c0_15 = arith.constant 0 : index
      %16 = vector.load %arg4[%c0_14, %c0_15] : memref<128x16xbf16, #tpu.memory_space<vmem>>, vector<128x16xbf16>
      %c0_16 = arith.constant 0 : index
      %c0_17 = arith.constant 0 : index
      %17 = vector.load %arg6[%c0_16, %c0_17] : memref<16x128xbf16, #tpu.memory_space<vmem>>, vector<16x128xbf16>
      %cst_18 = arith.constant dense<0.000000e+00> : vector<128x128xf32>
      %18 = tpu.matmul %16, %17, %cst_18 {dimension_numbers = #tpu.dot_dimension_numbers<[1], [0], [0], [1], [0, 0, 1, 1], [], []>} : vector<128x16xbf16>, vector<16x128xbf16>, vector<128x128xf32> -> vector<128x128xf32>
      %19 = arith.truncf %15 : vector<128x16xf32> to vector<128x16xbf16>
      %c0_19 = arith.constant 0 : index
      %c0_20 = arith.constant 0 : index
      %20 = vector.load %arg7[%c0_19, %c0_20] : memref<16x128xbf16, #tpu.memory_space<vmem>>, vector<16x128xbf16>
      %cst_21 = arith.constant dense<0.000000e+00> : vector<128x128xf32>
      %21 = tpu.matmul %19, %20, %cst_21 {dimension_numbers = #tpu.dot_dimension_numbers<[1], [0], [0], [1], [0, 0, 1, 1], [], []>} : vector<128x16xbf16>, vector<16x128xbf16>, vector<128x128xf32> -> vector<128x128xf32>
      %22 = arith.addf %18, %21 : vector<128x128xf32>
      %c0_22 = arith.constant 0 : index
      %c0_23 = arith.constant 0 : index
      %23 = vector.load %arg8[%c0_22, %c0_23] : memref<1x128xf32, #tpu.memory_space<vmem>>, vector<1x128xf32>
      %24 = vector.broadcast %23 : vector<1x128xf32> to vector<128x128xf32>
      %25 = arith.addf %22, %24 : vector<128x128xf32>
      %cst_24 = arith.constant 0.000000e+00 : f32
      %26 = vector.broadcast %cst_24 : f32 to vector<128x128xf32>
      %27 = arith.maximumf %25, %26 : vector<128x128xf32>
      %c0_25 = arith.constant 0 : index
      %c0_26 = arith.constant 0 : index
      %28 = vector.load %arg9[%c0_25, %c0_26] : memref<128x128xf32, #tpu.memory_space<vmem>>, vector<128x128xf32>
      tpu.vector_store %arg9[%c0_25, %c0_26], %27 {strides = array<i32>} : memref<128x128xf32, #tpu.memory_space<vmem>>, vector<128x128xf32>,
    } else {
    }
    return
  }
  func.func @transform_0(%arg0: i32, %arg1: i32) -> (i32, i32) {
    %c0_i32 = arith.constant 0 : i32
    return %arg0, %arg1 : i32, i32
  }
  func.func @transform_1(%arg0: i32, %arg1: i32) -> (i32, i32) {
    %c0_i32 = arith.constant 0 : i32
    %c0_i32_0 = arith.constant 0 : i32
    return %arg1, %c0_i32 : i32, i32
  }
  func.func @transform_2(%arg0: i32, %arg1: i32) -> (i32, i32) {
    %c0_i32 = arith.constant 0 : i32
    %c0_i32_0 = arith.constant 0 : i32
    return %arg0, %c0_i32 : i32, i32
  }
  func.func @transform_3(%arg0: i32, %arg1: i32) -> (i32, i32) {
    %c0_i32 = arith.constant 0 : i32
    %c0_i32_0 = arith.constant 0 : i32
    return %arg0, %c0_i32 : i32, i32
  }
  func.func @transform_4(%arg0: i32, %arg1: i32) -> (i32, i32) {
    %c0_i32 = arith.constant 0 : i32
    %c0_i32_0 = arith.constant 0 : i32
    %c0_i32_1 = arith.constant 0 : i32
    return %c0_i32, %c0_i32_0 : i32, i32
  }
  func.func @transform_5(%arg0: i32, %arg1: i32) -> (i32, i32) {
    %c0_i32 = arith.constant 0 : i32
    %c0_i32_0 = arith.constant 0 : i32
    %c0_i32_1 = arith.constant 0 : i32
    return %c0_i32, %c0_i32_0 : i32, i32
  }
  func.func @transform_6(%arg0: i32, %arg1: i32) -> (i32, i32) {
    %c0_i32 = arith.constant 0 : i32
    %c0_i32_0 = arith.constant 0 : i32
    %c0_i32_1 = arith.constant 0 : i32
    return %c0_i32, %c0_i32_0 : i32, i32
  }
  func.func @transform_7(%arg0: i32, %arg1: i32) -> (i32, i32) {
    %c0_i32 = arith.constant 0 : i32
    %c0_i32_0 = arith.constant 0 : i32
    return %arg0, %c0_i32 : i32, i32
  }
}

module attributes {stable_mosaic.version = 11 : i64} {
  func.func @_clique_gconv_kernel(%arg0: i32, %arg1: i32, %arg2: memref<128x256xbf16, #tpu.memory_space<vmem>>, %arg3: memref<256x16xbf16, #tpu.memory_space<vmem>>, %arg4: memref<128x16xbf16, #tpu.memory_space<vmem>>, %arg5: memref<128x1xf32, #tpu.memory_space<vmem>>, %arg6: memref<16x128xbf16, #tpu.memory_space<vmem>>, %arg7: memref<16x128xbf16, #tpu.memory_space<vmem>>, %arg8: memref<1x128xf32, #tpu.memory_space<vmem>>, %arg9: memref<128x128xf32, #tpu.memory_space<vmem>>, %arg10: memref<128x16xf32, #tpu.memory_space<vmem>>) attributes {dimension_semantics = [#tpu.dimension_semantics<parallel>, #tpu.dimension_semantics<arbitrary>], iteration_bounds = array<i64: 2, 1>, scalar_prefetch = 0 : i64, scratch_operands = 1 : i64, tpu.core_type = #tpu.core_type<tc>, window_params = [{transform_indices = @transform_0, window_bounds = array<i64: 128, 256>}, {transform_indices = @transform_1, window_bounds = array<i64: 256, 16>}, {transform_indices = @transform_2, window_bounds = array<i64: 128, 16>}, {transform_indices = @transform_3, window_bounds = array<i64: 128, 1>}, {pipeline_mode = #tpu.pipeline_mode<synchronous>, transform_indices = @transform_4, window_bounds = array<i64: 16, 128>}, {pipeline_mode = #tpu.pipeline_mode<synchronous>, transform_indices = @transform_5, window_bounds = array<i64: 16, 128>}, {pipeline_mode = #tpu.pipeline_mode<synchronous>, transform_indices = @transform_6, window_bounds = array<i64: 1, 128>}, {transform_indices = @transform_7, window_bounds = array<i64: 128, 128>}]} {
    %c0_i32 = arith.constant 0 : i32
    %0 = arith.cmpi eq, %arg1, %c0_i32 : i32
    %1 = arith.extui %0 : i1 to i32
    %c0_i32_0 = arith.constant 0 : i32
    %2 = arith.cmpi ne, %1, %c0_i32_0 : i32
    scf.if %2 {
      %cst_10 = arith.constant 0.000000e+00 : f32
      %12 = vector.broadcast %cst_10 : f32 to vector<128x16xf32>
      %c0_11 = arith.constant 0 : index
      %c0_12 = arith.constant 0 : index
      %13 = vector.load %arg10[%c0_11, %c0_12] : memref<128x16xf32, #tpu.memory_space<vmem>>, vector<128x16xf32>
      tpu.vector_store %arg10[%c0_11, %c0_12], %12 {strides = array<i32>} : memref<128x16xf32, #tpu.memory_space<vmem>>, vector<128x16xf32>,
    } else {
    }
    %c0 = arith.constant 0 : index
    %c0_1 = arith.constant 0 : index
    %3 = vector.load %arg10[%c0, %c0_1] : memref<128x16xf32, #tpu.memory_space<vmem>>, vector<128x16xf32>
    %c0_2 = arith.constant 0 : index
    %c0_3 = arith.constant 0 : index
    %4 = vector.load %arg2[%c0_2, %c0_3] : memref<128x256xbf16, #tpu.memory_space<vmem>>, vector<128x256xbf16>
    %c0_4 = arith.constant 0 : index
    %c0_5 = arith.constant 0 : index
    %5 = vector.load %arg3[%c0_4, %c0_5] : memref<256x16xbf16, #tpu.memory_space<vmem>>, vector<256x16xbf16>
    %cst = arith.constant dense<0.000000e+00> : vector<128x16xf32>
    %6 = tpu.matmul %4, %5, %cst {dimension_numbers = #tpu.dot_dimension_numbers<[1], [0], [0], [1], [0, 0, 1, 1], [], []>} : vector<128x256xbf16>, vector<256x16xbf16>, vector<128x16xf32> -> vector<128x16xf32>
    %7 = arith.addf %3, %6 : vector<128x16xf32>
    %c0_6 = arith.constant 0 : index
    %c0_7 = arith.constant 0 : index
    %8 = vector.load %arg10[%c0_6, %c0_7] : memref<128x16xf32, #tpu.memory_space<vmem>>, vector<128x16xf32>
    tpu.vector_store %arg10[%c0_6, %c0_7], %7 {strides = array<i32>} : memref<128x16xf32, #tpu.memory_space<vmem>>, vector<128x16xf32>,
    %c0_i32_8 = arith.constant 0 : i32
    %9 = arith.cmpi eq, %arg1, %c0_i32_8 : i32
    %10 = arith.extui %9 : i1 to i32
    %c0_i32_9 = arith.constant 0 : i32
    %11 = arith.cmpi ne, %10, %c0_i32_9 : i32
    scf.if %11 {
      %c0_10 = arith.constant 0 : index
      %c0_11 = arith.constant 0 : index
      %12 = vector.load %arg10[%c0_10, %c0_11] : memref<128x16xf32, #tpu.memory_space<vmem>>, vector<128x16xf32>
      %c0_12 = arith.constant 0 : index
      %c0_13 = arith.constant 0 : index
      %13 = vector.load %arg5[%c0_12, %c0_13] : memref<128x1xf32, #tpu.memory_space<vmem>>, vector<128x1xf32>
      %14 = vector.broadcast %13 : vector<128x1xf32> to vector<128x16xf32>
      %15 = arith.mulf %12, %14 : vector<128x16xf32>
      %c0_14 = arith.constant 0 : index
      %c0_15 = arith.constant 0 : index
      %16 = vector.load %arg4[%c0_14, %c0_15] : memref<128x16xbf16, #tpu.memory_space<vmem>>, vector<128x16xbf16>
      %c0_16 = arith.constant 0 : index
      %c0_17 = arith.constant 0 : index
      %17 = vector.load %arg6[%c0_16, %c0_17] : memref<16x128xbf16, #tpu.memory_space<vmem>>, vector<16x128xbf16>
      %cst_18 = arith.constant dense<0.000000e+00> : vector<128x128xf32>
      %18 = tpu.matmul %16, %17, %cst_18 {dimension_numbers = #tpu.dot_dimension_numbers<[1], [0], [0], [1], [0, 0, 1, 1], [], []>} : vector<128x16xbf16>, vector<16x128xbf16>, vector<128x128xf32> -> vector<128x128xf32>
      %19 = arith.truncf %15 : vector<128x16xf32> to vector<128x16xbf16>
      %c0_19 = arith.constant 0 : index
      %c0_20 = arith.constant 0 : index
      %20 = vector.load %arg7[%c0_19, %c0_20] : memref<16x128xbf16, #tpu.memory_space<vmem>>, vector<16x128xbf16>
      %cst_21 = arith.constant dense<0.000000e+00> : vector<128x128xf32>
      %21 = tpu.matmul %19, %20, %cst_21 {dimension_numbers = #tpu.dot_dimension_numbers<[1], [0], [0], [1], [0, 0, 1, 1], [], []>} : vector<128x16xbf16>, vector<16x128xbf16>, vector<128x128xf32> -> vector<128x128xf32>
      %22 = arith.addf %18, %21 : vector<128x128xf32>
      %c0_22 = arith.constant 0 : index
      %c0_23 = arith.constant 0 : index
      %23 = vector.load %arg8[%c0_22, %c0_23] : memref<1x128xf32, #tpu.memory_space<vmem>>, vector<1x128xf32>
      %24 = vector.broadcast %23 : vector<1x128xf32> to vector<128x128xf32>
      %25 = arith.addf %22, %24 : vector<128x128xf32>
      %cst_24 = arith.constant 0.000000e+00 : f32
      %26 = vector.broadcast %cst_24 : f32 to vector<128x128xf32>
      %27 = arith.maximumf %25, %26 : vector<128x128xf32>
      %c0_25 = arith.constant 0 : index
      %c0_26 = arith.constant 0 : index
      %28 = vector.load %arg9[%c0_25, %c0_26] : memref<128x128xf32, #tpu.memory_space<vmem>>, vector<128x128xf32>
      tpu.vector_store %arg9[%c0_25, %c0_26], %27 {strides = array<i32>} : memref<128x128xf32, #tpu.memory_space<vmem>>, vector<128x128xf32>,
    } else {
    }
    return
  }
  func.func @transform_0(%arg0: i32, %arg1: i32) -> (i32, i32) {
    %c0_i32 = arith.constant 0 : i32
    return %arg0, %arg1 : i32, i32
  }
  func.func @transform_1(%arg0: i32, %arg1: i32) -> (i32, i32) {
    %c0_i32 = arith.constant 0 : i32
    %c0_i32_0 = arith.constant 0 : i32
    return %arg1, %c0_i32 : i32, i32
  }
  func.func @transform_2(%arg0: i32, %arg1: i32) -> (i32, i32) {
    %c0_i32 = arith.constant 0 : i32
    %c0_i32_0 = arith.constant 0 : i32
    return %arg0, %c0_i32 : i32, i32
  }
  func.func @transform_3(%arg0: i32, %arg1: i32) -> (i32, i32) {
    %c0_i32 = arith.constant 0 : i32
    %c0_i32_0 = arith.constant 0 : i32
    return %arg0, %c0_i32 : i32, i32
  }
  func.func @transform_4(%arg0: i32, %arg1: i32) -> (i32, i32) {
    %c0_i32 = arith.constant 0 : i32
    %c0_i32_0 = arith.constant 0 : i32
    %c0_i32_1 = arith.constant 0 : i32
    return %c0_i32, %c0_i32_0 : i32, i32
  }
  func.func @transform_5(%arg0: i32, %arg1: i32) -> (i32, i32) {
    %c0_i32 = arith.constant 0 : i32
    %c0_i32_0 = arith.constant 0 : i32
    %c0_i32_1 = arith.constant 0 : i32
    return %c0_i32, %c0_i32_0 : i32, i32
  }
  func.func @transform_6(%arg0: i32, %arg1: i32) -> (i32, i32) {
    %c0_i32 = arith.constant 0 : i32
    %c0_i32_0 = arith.constant 0 : i32
    %c0_i32_1 = arith.constant 0 : i32
    return %c0_i32, %c0_i32_0 : i32, i32
  }
  func.func @transform_7(%arg0: i32, %arg1: i32) -> (i32, i32) {
    %c0_i32 = arith.constant 0 : i32
    %c0_i32_0 = arith.constant 0 : i32
    return %arg0, %c0_i32 : i32, i32
  }
}

</mosaic_0001>

<bundles_post_ra>
// kernel: tpu_custom_call.1
= control target key start
LH: loop header
LB: loop body
LE: loop exit
PB: predicated region body
PF: predicated region fallthrough
CT: control target
= control target key end

     0   :  { %12 = vsyncpa [#allocation4], 0  ;;  %s2169_s0 = inlined_call_operand.vmem [shape: bf16[256,256], index: 0, kind: input, shape index: {}]   ;;  %s2170_s1 = inlined_call_operand.vmem [shape: bf16[256,16], index: 1, kind: input, shape index: {}]   ;;  %s2171_s2 = inlined_call_operand.vmem [shape: bf16[256,16], index: 2, kind: input, shape index: {}]   ;;  %s2172_s3 = inlined_call_operand.vmem [shape: f32[256,1], index: 3, kind: input, shape index: {}]   ;;  %s2173_s4 = inlined_call_operand.vmem [shape: bf16[16,128], index: 4, kind: input, shape index: {}]   ;;  %s2174_s5 = inlined_call_operand.vmem [shape: bf16[16,128], index: 5, kind: input, shape index: {}]   ;;  %s2175_s6 = inlined_call_operand.vmem [shape: f32[1,128], index: 6, kind: input, shape index: {}]   ;;  %s2176_s7 = inlined_call_operand.hbm [shape: f32[256,128], index: 7, kind: output, shape index: {}]  }
   0x1   :  { %14 = vsyncpa [#allocation4 + $0x1], 0  ;;  %s1838_s24 = smov 0   ;;  %s1840_s25 = smov 0  }
   0x2   :  { %s1842_s26 = smov 0   ;;  %s1844_s27 = smov 0  }
   0x3   :  { %s1846_s28 = smov 0   ;;  %s1848_s29 = smov 0  }
   0x4 LB: > { %s1406_s30 = sadd.s32 4294967295, %s1791_s29   ;;  %s1407_s8 = sadd.s32 4294967294, %s1791_s29   ;;  %s1791_s29 = sphi %s1848_s29, %s20_s29   ;;  %s1787_s28 = sphi %s1846_s28, %s2183_s28   ;;  %s1783_s27 = sphi %s1844_s27, %s2182_s27   ;;  %s1779_s26 = sphi %s1842_s26, %s2181_s26   ;;  %s1775_s25 = sphi %s1840_s25, %s2180_s25   ;;  %s1771_s24 = sphi %s1838_s24, %s2179_s24  }
   0x5   : > { %s32_s9 = sadd.s32 1, %s1787_s28  ;;  %s208_s10 = sadd.s32 1, %s1779_s26 }
   0x6   : > { %p34_p0 = scmp.ge.s32.totalorder %s32_s9, 2  ;;  %p218_p1 = scmp.ne.s32.totalorder %s1779_s26, %s1775_s25 }
   0x7   : > { %p219_p2 = scmp.eq.s32.totalorder %s1406_s30, 1  ;;  %p224_p3 = scmp.ne.s32.totalorder %s1775_s25, %s1771_s24 }
   0x8   : > { %s2185_s9 = smov (%p34_p0, %s32_s9), 0  ;;  %p225_p5 = scmp.eq.s32.totalorder %s1407_s8, 1 }
   0x9   : > { %p1878_p4 = por %p219_p2, %p218_p1  ;;  %s205_s12 = ssub.s32 %s1787_s28, %s2185_s9 }
   0xa   : > { %p1411_p6 = scmp.ge.s32.totalorder %s1791_s29, 1  ;;  %p206_p7 = scmp.eq.s32.totalorder %s205_s12, 0 }
   0xb   : > { %p1885_p8 = por %p225_p5, %p224_p3  ;;  %p294_p9 = scmp.lt.s32.totalorder %s1791_s29, 3 }
   0xc   : > { %s1891_s14 = scalar_select %p206_p7, %s1779_s26, %s208_s10  }
   0xd   : > { %p295_p10 = pnand %p1411_p6, %p294_p9 }
   0xe   : > { %s1413_s17 = sshll.u32 (!%p295_p10), %s1783_s27, 4  ;;  %s1795_s10 = smov (!%p295_p10), [#allocation3]  }
   0xf   : > { %298 = sbr.rel (%p295_p10) target bundleno = 575 (0x23f), region = 48  ;;  %p348_p11 = scmp.lt.s32.totalorder (!%p295_p10), %s1413_s17, 31 }
  0x10   : > { %s1719_s12 = sshll.u32 (!%p295_p10), %s1795_s10, 4  ;;  %s1720_s12 = int_to_ptr.vmem [resolvable:$false] %s1719_s12 }
  0x11   : > { %s1721_s16 = scalar_lea.vmem (!%p295_p10), %s1720_s12, 4096 }
  0x14   : > { %v1665_v0 = vld [vmem:[%s2170_s1 + $0x78] sm:$0xff]   ;;  %v1667_v2 = vld [vmem:[%s2170_s1 + $0x70] sm:$0xff]   ;;  %v1793_v4 = vmov 0   ;;  %v1669_v5 = vld [vmem:[%s2170_s1 + $0x68] sm:$0xff]   ;;  %s2187_s17 = smov (!%p348_p11, %s1413_s17), 31  ;;  %vm382_vm0 = vcmask 130048  }
  0x15   : > { %v1666_v1 = vld [vmem:[%s2170_s1 + $0x38] sm:$0xff]   ;;  %1486 = vmatprep.subr.bf16.mxu0 %v1665_v0  ;;  %v1668_v3 = vld [vmem:[%s2170_s1 + $0x30] sm:$0xff]   ;;  %1663 = vset.pattern.permute.xlu0 %v1793_v4  ;;  %v1670_v6 = vld [vmem:[%s2170_s1 + $0x28] sm:$0xff]   ;;  %s1484_s20 = sshll.u32 %s2187_s17, 3  ;;  %v1794_v49 = vmov 0.0  }
  0x16   : > { %1487 = vmatpush3.bf16.msra.mxu0 %v1666_v1  ;;  %1664 = vset.pattern.permute.xlu1 %v1793_v4  ;;  %v1671_v7 = vld [vmem:[%s2170_s1 + $0x60] sm:$0xff]   ;;  %v1673_v9 = vld [vmem:[%s2170_s1 + $0x58] sm:$0xff]   ;;  %s1927_s8 = scalar_lea.vmem %s2169_s0, %s1484_s20  ;;  %v1675_v11 = vld [vmem:[%s2170_s1 + $0x50] sm:$0xff]   ;;  %s1948_s15 = scalar_lea.vmem %s2172_s3, %s1484_s20  ;;  %383 = vst.msk [vmem:[#allocation2] sm:$0xff] %vm382_vm0, %v1794_v49 }
  0x17   : > { %1488 = vmatprep.subr.bf16.mxu0 %v1667_v2  ;;  %v1672_v8 = vld [vmem:[%s2170_s1 + $0x20] sm:$0xff]   ;;  %v1674_v10 = vld [vmem:[%s2170_s1 + $0x18] sm:$0xff]   ;;  %v1676_v13 = vld [vmem:[%s2170_s1 + $0x10] sm:$0xff]   ;;  %s1417_s20 = sshll.u32 %s2187_s17, 2  ;;  %384 = vst.msk [vmem:[#allocation2 + $0x8] sm:$0xff] %vm382_vm0, %v1794_v49 }
  0x18   : > { %v1683_v12 = vld [vmem:[%s1927_s8 + $0x4] ss:$8 sps:$4 sm:$0xff]   ;;  %v790_v19 = vld [vmem:[%s1948_s15 + $0x10] sm:$0xff]  ;;  %v791_v21 = vld [vmem:[%s1948_s15 + $0x18] sm:$0xff]  ;;  %s1968_s30 = scalar_lea.vmem %s2171_s2, %s1417_s20  ;;  %385 = vst.msk [vmem:[#allocation2 + $0x10] sm:$0xff] %vm382_vm0, %v1794_v49  ;;  %s1485_s20 = sshll.u32 %s1783_s27, 11 }
  0x19   : > { %671 = vmatprep.mubr.bf16.mxu0 %v1683_v12  ;;  %v1677_v14 = vld [vmem:[%s2170_s1 + $0x48] sm:$0xff]   ;;  %v1679_v16 = vld [vmem:[%s2170_s1 + $0x40] sm:$0xff]   ;;  %816 = vperm.xlu1 %1664, %v790_v19   ;;  %v1684_v23 = vld [vmem:[%s1927_s8 + $0x14] ss:$8 sps:$4 sm:$0xff]   ;;  %386 = vst.msk [vmem:[#allocation2 + $0x18] sm:$0xff] %vm382_vm0, %v1794_v49  ;;  %s2116_s17 = scalar_lea.hbm %s2176_s7, %s1485_s20 }
  0x1a   : > { %1489 = vmatpush3.bf16.msra.mxu0 %v1668_v3  ;;  %v1678_v15 = vld [vmem:[%s2170_s1 + $0x8] sm:$0xff]   ;;  %v788_v17 = vld [vmem:[%s1948_s15] sm:$0xff]  ;;  %v794_v26 = vld [vmem:[%s1948_s15 + $0x30] sm:$0xff]  ;;  %387 = vst.msk [vmem:[#allocation2 + $0x20] sm:$0xff] %vm382_vm0, %v1794_v49 }
  0x1b   : > { %1490 = vmatprep.subr.bf16.mxu0 %v1669_v5  ;;  %v1680_v18 = vld [vmem:[%s2170_s1] sm:$0xff]   ;;  %806 = vperm.xlu0 %1663, %v788_v17   ;;  %v789_v20 = vld [vmem:[%s1948_s15 + $0x8] sm:$0xff]  ;;  %v795_v27 = vld [vmem:[%s1948_s15 + $0x38] sm:$0xff]  ;;  %388 = vst.msk [vmem:[#allocation2 + $0x28] sm:$0xff] %vm382_vm0, %v1794_v49 }
  0x1c   : > { %v1681_v22 = vld [vmem:[%s1927_s8] ss:$8 sps:$4 sm:$0xff]   ;;  %v1686_v28 = vld [vmem:[%s1927_s8 + $0x10] ss:$8 sps:$4 sm:$0xff]   ;;  %v1687_v29 = vld [vmem:[%s1927_s8 + $0x24] ss:$8 sps:$4 sm:$0xff]  }
  0x1d   : > { %v792_v24 = vld [vmem:[%s1948_s15 + $0x20] sm:$0xff]  ;;  %v793_v25 = vld [vmem:[%s1948_s15 + $0x28] sm:$0xff]  ;;  %821 = vperm.xlu1 %1664, %v791_v21   ;;  %v798_v32 = vld [vmem:[%s1948_s15 + $0x50] sm:$0xff]  ;;  %389 = vst.msk [vmem:[#allocation2 + $0x30] sm:$0xff] %vm382_vm0, %v1794_v49 }
  0x1e   : > { %1491 = vmatpush3.bf16.msra.mxu0 %v1670_v6  ;;  %v796_v30 = vld [vmem:[%s1948_s15 + $0x40] sm:$0xff]  ;;  %v797_v31 = vld [vmem:[%s1948_s15 + $0x48] sm:$0xff]  ;;  %v799_v33 = vld [vmem:[%s1948_s15 + $0x58] sm:$0xff]  ;;  %390 = vst.msk [vmem:[#allocation2 + $0x38] sm:$0xff] %vm382_vm0, %v1794_v49 }
  0x1f   : > { %1492 = vmatprep.subr.bf16.mxu0 %v1671_v7  ;;  %811 = vperm.xlu0 %1663, %v789_v20   ;;  %v1689_v34 = vld [vmem:[%s1927_s8 + $0x20] ss:$8 sps:$4 sm:$0xff]   ;;  %v1690_v35 = vld [vmem:[%s1927_s8 + $0x34] ss:$8 sps:$4 sm:$0xff]   ;;  %v1692_v40 = vld [vmem:[%s1927_s8 + $0x30] ss:$8 sps:$4 sm:$0xff]  }
  0x20   : > { %v800_v36 = vld [vmem:[%s1948_s15 + $0x60] sm:$0xff]  ;;  %v801_v37 = vld [vmem:[%s1948_s15 + $0x68] sm:$0xff]  ;;  %v802_v38 = vld [vmem:[%s1948_s15 + $0x70] sm:$0xff]  ;;  %391 = vst.msk [vmem:[#allocation2 + $0x40] sm:$0xff] %vm382_vm0, %v1794_v49 }
  0x21   : > { %831 = vperm.xlu1 %1664, %v793_v25   ;;  %v803_v39 = vld [vmem:[%s1948_s15 + $0x78] sm:$0xff]  ;;  %v1693_v41 = vld [vmem:[%s1927_s8 + $0x44] ss:$8 sps:$4 sm:$0xff]   ;;  %v1695_v42 = vld [vmem:[%s1927_s8 + $0x40] ss:$8 sps:$4 sm:$0xff]   ;;  %392 = vst.msk [vmem:[#allocation2 + $0x48] sm:$0xff] %vm382_vm0, %v1794_v49 }
  0x22   : > { %1493 = vmatpush3.bf16.msra.mxu0 %v1672_v8  ;;  %v1696_v43 = vld [vmem:[%s1927_s8 + $0x54] ss:$8 sps:$4 sm:$0xff]   ;;  %v1698_v44 = vld [vmem:[%s1927_s8 + $0x50] ss:$8 sps:$4 sm:$0xff]   ;;  %v1699_v45 = vld [vmem:[%s1927_s8 + $0x64] ss:$8 sps:$4 sm:$0xff]  }
  0x23   : > { %1494 = vmatprep.subr.bf16.mxu0 %v1673_v9  ;;  %826 = vperm.xlu0 %1663, %v792_v24   ;;  %v1701_v46 = vld [vmem:[%s1927_s8 + $0x60] ss:$8 sps:$4 sm:$0xff]   ;;  %v1702_v47 = vld [vmem:[%s1927_s8 + $0x74] ss:$8 sps:$4 sm:$0xff]   ;;  %v1704_v48 = vld [vmem:[%s1927_s8 + $0x70] ss:$8 sps:$4 sm:$0xff]  }
  0x24   : > { %393 = vst.msk [vmem:[#allocation2 + $0x50] sm:$0xff] %vm382_vm0, %v1794_v49  ;;  %394 = vst.msk [vmem:[#allocation2 + $0x58] sm:$0xff] %vm382_vm0, %v1794_v49  ;;  %v1705_v50 = vld [vmem:[%s2174_s5] sm:$0xff]   ;;  %v400_v58 = vld [vmem:[#allocation2 + $0x8] sm:$0xff]  ;;  %s343_s15 = sand.u32 1, %s1775_s25  }
  0x25   : > { %841 = vperm.xlu1 %1664, %v795_v27   ;;  %395 = vst.msk [vmem:[#allocation2 + $0x60] sm:$0xff] %vm382_vm0, %v1794_v49  ;;  %396 = vst.msk [vmem:[#allocation2 + $0x68] sm:$0xff] %vm382_vm0, %v1794_v49  ;;  %1568 = vmatprep.subr.bf16.mxu1 %v1705_v50  ;;  %v2015_v51 = vld [vmem:[%s2173_s4] sm:$0xff]   ;;  %v401_v63 = vld [vmem:[#allocation2 + $0x10] sm:$0xff]  ;;  %s1412_s19 = sshll.u32 %s343_s15, 7  ;;  %s2124_s27 = scalar_lea.sflag [#allocation4], %s343_s15 }
  0x26   : > { %1495 = vmatpush3.bf16.msra.mxu0 %v1674_v10  ;;  %397 = vst.msk [vmem:[#allocation2 + $0x70] sm:$0xff] %vm382_vm0, %v1794_v49  ;;  %398 = vst.msk [vmem:[#allocation2 + $0x78] sm:$0xff] %vm382_vm0, %v1794_v49  ;;  %1569 = vmatpush3.bf16.msra.mxu1 %v1705_v50  ;;  %v399_v53 = vld [vmem:[#allocation2] sm:$0xff]  ;;  %v402_v5 = vld [vmem:[#allocation2 + $0x18] sm:$0xff]  ;;  %s2077_s21 = scalar_lea.vmem [#allocation3], %s1412_s19 }
  0x27   : > { %1496 = vmatprep.subr.bf16.mxu0 %v1675_v11  ;;  %836 = vperm.xlu0 %1663, %v794_v26   ;;  %s1291_s22 = sshll.u32 %s2077_s21, 4  ;;  %s2118_s22 = int_to_ptr.vmem [resolvable:$true] %s1291_s22 }
  0x28   : > { %1586 = vmatprep.subr.bf16.mxu1 %v2015_v51  ;;  %s1715_s8 = scalar_lea.vmem %s2118_s22, 2048  ;;  %p1722_p1 = scmp.lt.s32.totalorder %s2118_s22, %s1720_s12 }
  0x29   : > { %851 = vperm.xlu1 %1664, %v797_v31   ;;  %p1716_p12 = scmp.ne.s32.totalorder %s2118_s22, %s1715_s8  ;;  %p1723_p2 = scmp.lt.s32.totalorder %s1721_s16, %s1715_s8 }
  0x2a   : > { %1497 = vmatpush3.bf16.msra.mxu0 %v1676_v13  ;;  %v403_v13 = vld [vmem:[#allocation2 + $0x20] sm:$0xff] }
  0x2b   : > { %1498 = vmatprep.subr.bf16.mxu0 %v1677_v14  ;;  %846 = vperm.xlu0 %1663, %v796_v30   ;;  %v405_v30 = vld [vmem:[#allocation2 + $0x30] sm:$0xff]  ;;  %p1717_p13 = pnand %p1716_p12, %p1878_p4  ;;  %p1724_p3 = por %p1723_p2, %p1722_p1 }
  0x2d   : > { %861 = vperm.xlu1 %1664, %v799_v33   ;;  %p1718_p0 = pneg %p1717_p13 }
  0x2e   : > { %1499 = vmatpush3.bf16.msra.mxu0 %v1678_v15 }
  0x2f   : > { %1500 = vmatprep.subr.bf16.mxu0 %v1679_v16  ;;  %856 = vperm.xlu0 %1663, %v798_v32   ;;  %p1725_p5 = pnand %p1724_p3, %p1718_p0 }
  0x31   : > { %871 = vperm.xlu1 %1664, %v801_v37  }
  0x32   : > { %1501 = vmatpush3.bf16.msra.mxu0 %v1680_v18 }
  0x33   : > { %866 = vperm.xlu0 %1663, %v800_v36  }
  0x35   : > { %672 = vmatmul.mubr.bf16.vlgmr.msra.gmra.mxu0 %v1681_v22  ;;  %881 = vperm.xlu1 %1664, %v803_v39   ;;  %v404_v22 = vld [vmem:[#allocation2 + $0x28] sm:$0xff] }
  0x36   : > { %679 = vmatprep.mubr.bf16.mxu0 %v1684_v23 }
  0x37   : > { %876 = vperm.xlu0 %1663, %v802_v38   ;;  %v406_v38 = vld [vmem:[#allocation2 + $0x38] sm:$0xff] }
  0x3d   : > { %680 = vmatmul.mubr.bf16.gmra.mxu0 %v1686_v28 }
  0x3e   : > { %687 = vmatprep.mubr.bf16.mxu0 %v1687_v29 }
  0x45   : > { %688 = vmatmul.mubr.bf16.gmra.mxu0 %v1689_v34 }
  0x46   : > { %695 = vmatprep.mubr.bf16.mxu0 %v1690_v35 }
  0x4d   : > { %696 = vmatmul.mubr.bf16.gmra.mxu0 %v1692_v40 }
  0x4e   : > { %703 = vmatprep.mubr.bf16.mxu0 %v1693_v41 }
  0x55   : > { %704 = vmatmul.mubr.bf16.gmra.mxu0 %v1695_v42 }
  0x56   : > { %711 = vmatprep.mubr.bf16.mxu0 %v1696_v43 }
  0x5d   : > { %712 = vmatmul.mubr.bf16.gmra.mxu0 %v1698_v44 }
  0x5e   : > { %719 = vmatprep.mubr.bf16.mxu0 %v1699_v45 }
  0x65   : > { %720 = vmatmul.mubr.bf16.gmra.mxu0 %v1701_v46 }
  0x66   : > { %727 = vmatprep.mubr.bf16.mxu0 %v1702_v47  ;;  %v407_v47 = vld [vmem:[#allocation2 + $0x40] sm:$0xff] }
  0x6d   : > { %728 = vmatmul.mubr.bf16.gmra.mxu0 %v1704_v48 }
  0x94   : > { %v817_v18 = vpop.permute.xlu1 %816 }
  0x96   : > { %v807_v1 = vpop.permute.xlu0 %806 }
  0x98   : > { %v822_v28 = vpop.permute.xlu1 %821 }
  0x9a   : > { %v812_v10 = vpop.permute.xlu0 %811 }
  0x9c   : > { %v832_v45 = vpop.permute.xlu1 %831 }
  0x9e   : > { %v827_v43 = vpop.permute.xlu0 %826 }
  0xf5   : > { %v1502_v52 = vpop.f32.mrf.mxu0 }
  0xf7   : > { %v1503_v54 = vpop.f32.mrf.mxu0 }
  0xf8   : > { %v1504_v55 = vadd.f32 %v1503_v54, %v1502_v52 }
  0xf9   : > { %v1505_v56 = vpop.f32.mrf.mxu0 }
  0xfa   : > { %v736_v57 = vadd.f32 %v1504_v55, %v399_v53 }
  0xfb   : > { %v1506_v59 = vpop.f32.mrf.mxu0 }
  0xfc   : > { %753 = vst.msk [vmem:[#allocation2] sm:$0xff] %vm382_vm0, %v736_v57  ;;  %v1507_v60 = vadd.f32 %v1506_v59, %v1505_v56  ;;  %v408_v56 = vld [vmem:[#allocation2 + $0x48] sm:$0xff] }
  0xfd   : > { %v1508_v61 = vpop.f32.mrf.mxu0 }
  0xfe   : > { %v737_v62 = vadd.f32 %v1507_v60, %v400_v58  ;;  %v837_v60 = vpop.permute.xlu0 %836 }
  0xff   : > { %v1509_v0 = vpop.f32.mrf.mxu0 }
 0x100   : > { %754 = vst.msk [vmem:[#allocation2 + $0x8] sm:$0xff] %vm382_vm0, %v737_v62  ;;  %v1510_v2 = vadd.f32 %v1509_v0, %v1508_v61  ;;  %v842_v62 = vpop.permute.xlu1 %841 }
 0x101   : > { %v1511_v3 = vpop.f32.mrf.mxu0 }
 0x102   : > { %v738_v4 = vadd.f32 %v1510_v2, %v401_v63  ;;  %v409_v63 = vld [vmem:[#allocation2 + $0x50] sm:$0xff] }
 0x103   : > { %v1512_v6 = vpop.f32.mrf.mxu0  ;;  %v772_v8 = vld [vmem:[#allocation2] sm:$0xff] }
 0x104   : > { %755 = vst.msk [vmem:[#allocation2 + $0x10] sm:$0xff] %vm382_vm0, %v738_v4  ;;  %v1513_v7 = vadd.f32 %v1512_v6, %v1511_v3  ;;  %v884_v15 = vmul.f32 %v807_v1, %v772_v8  ;;  %v410_v8 = vld [vmem:[#allocation2 + $0x58] sm:$0xff] }
 0x105   : > { %v1514_v9 = vpop.f32.mrf.mxu0 }
 0x106   : > { %v739_v11 = vadd.f32 %v1513_v7, %v402_v5 }
 0x107   : > { %v773_v12 = vld [vmem:[#allocation2 + $0x8] sm:$0xff]  ;;  %v1515_v14 = vpop.f32.mrf.mxu0 }
 0x108   : > { %756 = vst.msk [vmem:[#allocation2 + $0x18] sm:$0xff] %vm382_vm0, %v739_v11  ;;  %v885_v16 = vmul.f32 %v812_v10, %v773_v12  ;;  %v1516_v17 = vadd.f32 %v1515_v14, %v1514_v9 }
 0x109   : > { %v1517_v19 = vpop.f32.mrf.mxu0 }
 0x10a   : > { %v740_v20 = vadd.f32 %v1516_v17, %v403_v13  ;;  %v918_v21 = vpack.c.bf16 %v885_v16, %v884_v15  ;;  %v847_v13 = vpop.permute.xlu0 %846  ;;  %v852_v15 = vpop.permute.xlu1 %851  ;;  %v411_v16 = vld [vmem:[#allocation2 + $0x60] sm:$0xff] }
 0x10b   : > { %v1518_v23 = vpop.f32.mrf.mxu0  ;;  %v774_v25 = vld [vmem:[#allocation2 + $0x10] sm:$0xff] }
 0x10c   : > { %757 = vst.msk [vmem:[#allocation2 + $0x20] sm:$0xff] %vm382_vm0, %v740_v20  ;;  %v1519_v24 = vadd.f32 %v1518_v23, %v1517_v19  ;;  %1570 = vmatprep.mubr.msk.bf16.mxu1 %vm382_vm0, %v918_v21  ;;  %v886_v32 = vmul.f32 %v817_v18, %v774_v25  ;;  %v412_v25 = vld [vmem:[#allocation2 + $0x68] sm:$0xff] }
 0x10d   : > { %v1520_v26 = vpop.f32.mrf.mxu0 }
 0x10e   : > { %v741_v27 = vadd.f32 %v1519_v24, %v404_v22 }
 0x10f   : > { %v775_v29 = vld [vmem:[#allocation2 + $0x18] sm:$0xff]  ;;  %v1521_v31 = vpop.f32.mrf.mxu0 }
 0x110   : > { %v887_v33 = vmul.f32 %v822_v28, %v775_v29  ;;  %758 = vst.msk [vmem:[#allocation2 + $0x28] sm:$0xff] %vm382_vm0, %v741_v27  ;;  %v1522_v34 = vadd.f32 %v1521_v31, %v1520_v26 }
 0x111   : > { %v1523_v35 = vpop.f32.mrf.mxu0 }
 0x112   : > { %v919_v36 = vpack.c.bf16 %v887_v33, %v886_v32  ;;  %v742_v37 = vadd.f32 %v1522_v34, %v405_v30  ;;  %v857_v30 = vpop.permute.xlu0 %856  ;;  %v862_v32 = vpop.permute.xlu1 %861  ;;  %v413_v33 = vld [vmem:[#allocation2 + $0x70] sm:$0xff] }
 0x113   : > { %v1524_v39 = vpop.f32.mrf.mxu0  ;;  %v776_v41 = vld [vmem:[#allocation2 + $0x20] sm:$0xff] }
 0x114   : > { %759 = vst.msk [vmem:[#allocation2 + $0x30] sm:$0xff] %vm382_vm0, %v742_v37  ;;  %v1525_v40 = vadd.f32 %v1524_v39, %v1523_v35  ;;  %1571 = vmatmul.mubr.msk.bf16.vlgmr.msra.gmra.mxu1 %vm382_vm0, %v919_v36  ;;  %v888_v49 = vmul.f32 %v827_v43, %v776_v41 }
 0x115   : > { %v1526_v42 = vpop.f32.mrf.mxu0  ;;  %1587 = vmatpush3.bf16.msra.mxu1 %v2015_v51 }
 0x116   : > { %v743_v44 = vadd.f32 %v1525_v40, %v406_v38 }
 0x117   : > { %v777_v46 = vld [vmem:[#allocation2 + $0x28] sm:$0xff]  ;;  %v1527_v48 = vpop.f32.mrf.mxu0 }
 0x118   : > { %v889_v50 = vmul.f32 %v832_v45, %v777_v46  ;;  %760 = vst.msk [vmem:[#allocation2 + $0x38] sm:$0xff] %vm382_vm0, %v743_v44  ;;  %v1528_v52 = vadd.f32 %v1527_v48, %v1526_v42  ;;  %v414_v42 = vld [vmem:[#allocation2 + $0x78] sm:$0xff]  ;;  %v872_v48 = vpop.permute.xlu1 %871 }
 0x119   : > { %v1529_v53 = vpop.f32.mrf.mxu0 }
 0x11a   : > { %v920_v54 = vpack.c.bf16 %v889_v50, %v888_v49  ;;  %v744_v55 = vadd.f32 %v1528_v52, %v407_v47  ;;  %v867_v47 = vpop.permute.xlu0 %866 }
 0x11b   : > { %v1530_v57 = vpop.f32.mrf.mxu0  ;;  %v778_v51 = vld [vmem:[#allocation2 + $0x30] sm:$0xff] }
 0x11c   : > { %761 = vst.msk [vmem:[#allocation2 + $0x40] sm:$0xff] %vm382_vm0, %v744_v55  ;;  %v1531_v58 = vadd.f32 %v1530_v57, %v1529_v53  ;;  %1574 = vmatprep.mubr.msk.bf16.mxu1 %vm382_vm0, %v920_v54  ;;  %v890_v2 = vmul.f32 %v837_v60, %v778_v51 }
 0x11d   : > { %v1532_v59 = vpop.f32.mrf.mxu0 }
 0x11e   : > { %v745_v61 = vadd.f32 %v1531_v58, %v408_v56  ;;  %v877_v55 = vpop.permute.xlu0 %876  ;;  %v882_v56 = vpop.permute.xlu1 %881 }
 0x11f   : > { %v1533_v0 = vpop.f32.mrf.mxu0  ;;  %v779_v1 = vld [vmem:[#allocation2 + $0x38] sm:$0xff] }
 0x120   : > { %762 = vst.msk [vmem:[#allocation2 + $0x48] sm:$0xff] %vm382_vm0, %v745_v61  ;;  %v1534_v3 = vadd.f32 %v1533_v0, %v1532_v59  ;;  %v891_v4 = vmul.f32 %v842_v62, %v779_v1  ;;  %v1707_v59 = vld [vmem:[%s1968_s30] sm:$0xff]   ;;  %v1708_v61 = vld [vmem:[%s1968_s30 + $0x8] sm:$0xff]   ;;  %v1709_v62 = vld [vmem:[%s1968_s30 + $0x10] sm:$0xff]  }
 0x121   : > { %v1535_v5 = vpop.f32.mrf.mxu0  ;;  %v1711_v0 = vld [vmem:[%s1968_s30 + $0x20] sm:$0xff]   ;;  %v1712_v1 = vld [vmem:[%s1968_s30 + $0x28] sm:$0xff]  }
 0x122   : > { %v746_v6 = vadd.f32 %v1534_v3, %v409_v63  ;;  %v921_v7 = vpack.c.bf16 %v891_v4, %v890_v2  ;;  %v1710_v63 = vld [vmem:[%s1968_s30 + $0x18] sm:$0xff]   ;;  %v1713_v2 = vld [vmem:[%s1968_s30 + $0x30] sm:$0xff]  }
 0x123   : > { %v1536_v9 = vpop.f32.mrf.mxu0  ;;  %v780_v12 = vld [vmem:[#allocation2 + $0x40] sm:$0xff]  ;;  %v1714_v3 = vld [vmem:[%s1968_s30 + $0x38] sm:$0xff]  }
 0x124   : > { %763 = vst.msk [vmem:[#allocation2 + $0x50] sm:$0xff] %vm382_vm0, %v746_v6  ;;  %v1537_v10 = vadd.f32 %v1536_v9, %v1535_v5  ;;  %1575 = vmatmul.mubr.msk.bf16.gmra.mxu1 %vm382_vm0, %v921_v7  ;;  %v892_v20 = vmul.f32 %v847_v13, %v780_v12 }
 0x125   : > { %v1538_v11 = vpop.f32.mrf.mxu0 }
 0x126   : > { %v747_v14 = vadd.f32 %v1537_v10, %v410_v8 }
 0x127   : > { %v1539_v17 = vpop.f32.mrf.mxu0  ;;  %v781_v18 = vld [vmem:[#allocation2 + $0x48] sm:$0xff] }
 0x128   : > { %764 = vst.msk [vmem:[#allocation2 + $0x58] sm:$0xff] %vm382_vm0, %v747_v14  ;;  %v1540_v19 = vadd.f32 %v1539_v17, %v1538_v11  ;;  %v893_v21 = vmul.f32 %v852_v15, %v781_v18 }
 0x129   : > { %v1541_v22 = vpop.f32.mrf.mxu0 }
 0x12a   : > { %v748_v23 = vadd.f32 %v1540_v19, %v411_v16  ;;  %v922_v24 = vpack.c.bf16 %v893_v21, %v892_v20  ;;  %v2071_v21 = vld [vmem:[%s2175_s6] ss:$0 sm:$0xff] }
 0x12b   : > { %v1542_v26 = vpop.f32.mrf.mxu0  ;;  %v782_v29 = vld [vmem:[#allocation2 + $0x50] sm:$0xff] }
 0x12c   : > { %765 = vst.msk [vmem:[#allocation2 + $0x60] sm:$0xff] %vm382_vm0, %v748_v23  ;;  %v1543_v27 = vadd.f32 %v1542_v26, %v1541_v22  ;;  %1578 = vmatprep.mubr.msk.bf16.mxu1 %vm382_vm0, %v922_v24  ;;  %v894_v37 = vmul.f32 %v857_v30, %v782_v29 }
 0x12d   : > { %v1544_v28 = vpop.f32.mrf.mxu0 }
 0x12e   : > { %v749_v31 = vadd.f32 %v1543_v27, %v412_v25 }
 0x12f   : > { %v1545_v34 = vpop.f32.mrf.mxu0  ;;  %v783_v35 = vld [vmem:[#allocation2 + $0x58] sm:$0xff] }
 0x130   : > { %766 = vst.msk [vmem:[#allocation2 + $0x68] sm:$0xff] %vm382_vm0, %v749_v31  ;;  %v1546_v36 = vadd.f32 %v1545_v34, %v1544_v28  ;;  %v895_v38 = vmul.f32 %v862_v32, %v783_v35 }
 0x131   : > { %v1547_v39 = vpop.f32.mrf.mxu0 }
 0x132   : > { %v750_v40 = vadd.f32 %v1546_v36, %v413_v33  ;;  %v923_v41 = vpack.c.bf16 %v895_v38, %v894_v37 }
 0x133   : > { %v1548_v43 = vpop.f32.mrf.mxu0  ;;  %v784_v45 = vld [vmem:[#allocation2 + $0x60] sm:$0xff] }
 0x134   : > { %767 = vst.msk [vmem:[#allocation2 + $0x70] sm:$0xff] %vm382_vm0, %v750_v40  ;;  %v1549_v44 = vadd.f32 %v1548_v43, %v1547_v39  ;;  %1579 = vmatmul.mubr.msk.bf16.gmra.mxu1 %vm382_vm0, %v923_v41  ;;  %v896_v50 = vmul.f32 %v867_v47, %v784_v45 }
 0x136   : > { %v751_v46 = vadd.f32 %v1549_v44, %v414_v42 }
 0x137   : > { %v785_v49 = vld [vmem:[#allocation2 + $0x68] sm:$0xff] }
 0x138   : > { %768 = vst.msk [vmem:[#allocation2 + $0x78] sm:$0xff] %vm382_vm0, %v751_v46  ;;  %v897_v52 = vmul.f32 %v872_v48, %v785_v49 }
 0x13a   : > { %v924_v53 = vpack.c.bf16 %v897_v52, %v896_v50 }
 0x13b   : > { %v786_v54 = vld [vmem:[#allocation2 + $0x70] sm:$0xff] }
 0x13c   : > { %1582 = vmatprep.mubr.msk.bf16.mxu1 %vm382_vm0, %v924_v53  ;;  %v898_v58 = vmul.f32 %v877_v55, %v786_v54 }
 0x13f   : > { %v787_v57 = vld [vmem:[#allocation2 + $0x78] sm:$0xff] }
 0x140   : > { %v899_v51 = vmul.f32 %v882_v56, %v787_v57 }
 0x142   : > { %v925_v60 = vpack.c.bf16 %v899_v51, %v898_v58 }
 0x144   : > { %1583 = vmatmul.mubr.msk.bf16.gmra.mxu1 %vm382_vm0, %v925_v60 }
 0x145   : > { %1588 = vmatprep.mubr.msk.bf16.mxu1 %vm382_vm0, %v1707_v59 }
 0x14c   : > { %1589 = vmatmul.mubr.msk.bf16.vlgmr.msra.gmra.mxu1 %vm382_vm0, %v1708_v61 }
 0x14d   : > { %1592 = vmatprep.mubr.msk.bf16.mxu1 %vm382_vm0, %v1709_v62 }
 0x154   : > { %1593 = vmatmul.mubr.msk.bf16.gmra.mxu1 %vm382_vm0, %v1710_v63 }
 0x155   : > { %1596 = vmatprep.mubr.msk.bf16.mxu1 %vm382_vm0, %v1711_v0 }
 0x15c   : > { %1597 = vmatmul.mubr.msk.bf16.gmra.mxu1 %vm382_vm0, %v1712_v1 }
 0x15d   : > { %1600 = vmatprep.mubr.msk.bf16.mxu1 %vm382_vm0, %v1713_v2 }
 0x164   : > { %1601 = vmatmul.mubr.msk.bf16.gmra.mxu1 %vm382_vm0, %v1714_v3 }
 0x1d4   : > { %v1572_v4 = vpop.f32.mrf.mxu1 }
 0x1d6   : > { %v992_v5 = vpop.f32.mrf.mxu1 }
 0x1d8   : > { %v1573_v6 = vpop.f32.mrf.mxu1 }
 0x1da   : > { %v995_v7 = vpop.f32.mrf.mxu1 }
 0x1e4   : > { %v1576_v8 = vpop.f32.mrf.mxu1 }
 0x1e6   : > { %v1008_v9 = vpop.f32.mrf.mxu1 }
 0x1e8   : > { %v1577_v10 = vpop.f32.mrf.mxu1 }
 0x1ea   : > { %v1011_v11 = vpop.f32.mrf.mxu1 }
 0x1f4   : > { %v1580_v12 = vpop.f32.mrf.mxu1 }
 0x1f6   : > { %v1024_v13 = vpop.f32.mrf.mxu1 }
 0x1f8   : > { %v1581_v14 = vpop.f32.mrf.mxu1 }
 0x1fa   : > { %v1027_v15 = vpop.f32.mrf.mxu1 }
 0x204   : > { %v2059_v16 = vpop.f32.mrf.mxu1 }
 0x206   : > { %v2061_v17 = vpop.f32.mrf.mxu1 }
 0x208   : > { %v2063_v18 = vpop.f32.mrf.mxu1 }
 0x20a   : > { %v2065_v19 = vpop.f32.mrf.mxu1 }
 0x20c   : > { %v1590_v20 = vpop.f32.mrf.mxu1 }
 0x20d   : > { %v1168_v22 = vadd.f32 %v1590_v20, %v1572_v4 }
 0x20e   : > { %v1159_v23 = vpop.f32.mrf.mxu1 }
 0x20f   : > { %v1231_v24 = vadd.f32 %v2071_v21, %v1168_v22  ;;  %v1160_v25 = vadd.f32 %v1159_v23, %v992_v5 }
 0x210   : > { %v1591_v26 = vpop.f32.mrf.mxu1 }
 0x211   : > { %v1247_v27 = vmax.f32 %v1231_v24, 0.0  ;;  %v1229_v28 = vadd.f32 %v2071_v21, %v1160_v25  ;;  %v1171_v29 = vadd.f32 %v1591_v26, %v1573_v6 }
 0x212   : > { %v1162_v30 = vpop.f32.mrf.mxu1 }
 0x213   : > { %1263 = vst [vmem:[%s2077_s21 + $0x10] sm:$0xff] %v1247_v27  ;;  %v1245_v31 = vmax.f32 %v1229_v28, 0.0  ;;  %v1232_v32 = vadd.f32 %v2071_v21, %v1171_v29  ;;  %v1163_v33 = vadd.f32 %v1162_v30, %v995_v7 }
 0x214   : > { %v1594_v34 = vpop.f32.mrf.mxu1 }
 0x215   : > { %1261 = vst [vmem:[%s2077_s21] sm:$0xff] %v1245_v31  ;;  %v1248_v35 = vmax.f32 %v1232_v32, 0.0  ;;  %v1230_v36 = vadd.f32 %v2071_v21, %v1163_v33  ;;  %v1184_v37 = vadd.f32 %v1594_v34, %v1576_v8 }
 0x216   : > { %v1175_v38 = vpop.f32.mrf.mxu1 }
 0x217   : > { %1264 = vst [vmem:[%s2077_s21 + $0x18] sm:$0xff] %v1248_v35  ;;  %v1246_v39 = vmax.f32 %v1230_v36, 0.0  ;;  %v1235_v40 = vadd.f32 %v2071_v21, %v1184_v37  ;;  %v1176_v41 = vadd.f32 %v1175_v38, %v1008_v9 }
 0x218   : > { %v1595_v42 = vpop.f32.mrf.mxu1 }
 0x219   : > { %1262 = vst [vmem:[%s2077_s21 + $0x8] sm:$0xff] %v1246_v39  ;;  %v1251_v43 = vmax.f32 %v1235_v40, 0.0  ;;  %v1233_v44 = vadd.f32 %v2071_v21, %v1176_v41  ;;  %v1187_v45 = vadd.f32 %v1595_v42, %v1577_v10 }
 0x21a   : > { %v1178_v46 = vpop.f32.mrf.mxu1 }
 0x21b   : > { %1267 = vst [vmem:[%s2077_s21 + $0x30] sm:$0xff] %v1251_v43  ;;  %v1249_v47 = vmax.f32 %v1233_v44, 0.0  ;;  %v1236_v48 = vadd.f32 %v2071_v21, %v1187_v45  ;;  %v1179_v49 = vadd.f32 %v1178_v46, %v1011_v11 }
 0x21c   : > { %v1598_v50 = vpop.f32.mrf.mxu1 }
 0x21d   : > { %1265 = vst [vmem:[%s2077_s21 + $0x20] sm:$0xff] %v1249_v47  ;;  %v1252_v52 = vmax.f32 %v1236_v48, 0.0  ;;  %v1234_v53 = vadd.f32 %v2071_v21, %v1179_v49  ;;  %v1200_v54 = vadd.f32 %v1598_v50, %v1580_v12 }
 0x21e   : > { %v1191_v55 = vpop.f32.mrf.mxu1 }
 0x21f   : > { %1268 = vst [vmem:[%s2077_s21 + $0x38] sm:$0xff] %v1252_v52  ;;  %v1250_v56 = vmax.f32 %v1234_v53, 0.0  ;;  %v1239_v57 = vadd.f32 %v2071_v21, %v1200_v54  ;;  %v1192_v58 = vadd.f32 %v1191_v55, %v1024_v13 }
 0x220   : > { %v1599_v51 = vpop.f32.mrf.mxu1 }
 0x221   : > { %1266 = vst [vmem:[%s2077_s21 + $0x28] sm:$0xff] %v1250_v56  ;;  %v1255_v59 = vmax.f32 %v1239_v57, 0.0  ;;  %v1237_v60 = vadd.f32 %v2071_v21, %v1192_v58  ;;  %v1203_v61 = vadd.f32 %v1599_v51, %v1581_v14 }
 0x222   : > { %v1194_v62 = vpop.f32.mrf.mxu1 }
 0x223   : > { %1271 = vst [vmem:[%s2077_s21 + $0x50] sm:$0xff] %v1255_v59  ;;  %v1253_v63 = vmax.f32 %v1237_v60, 0.0  ;;  %v1240_v0 = vadd.f32 %v2071_v21, %v1203_v61  ;;  %v1195_v1 = vadd.f32 %v1194_v62, %v1027_v15 }
 0x224   : > { %v1602_v2 = vpop.f32.mrf.mxu1 }
 0x225   : > { %1269 = vst [vmem:[%s2077_s21 + $0x40] sm:$0xff] %v1253_v63  ;;  %v1256_v3 = vmax.f32 %v1240_v0, 0.0  ;;  %v1238_v4 = vadd.f32 %v2071_v21, %v1195_v1  ;;  %v1216_v5 = vadd.f32 %v1602_v2, %v2059_v16 }
 0x226   : > { %v1207_v6 = vpop.f32.mrf.mxu1 }
 0x227   : > { %1272 = vst [vmem:[%s2077_s21 + $0x58] sm:$0xff] %v1256_v3  ;;  %v1254_v7 = vmax.f32 %v1238_v4, 0.0  ;;  %v1243_v8 = vadd.f32 %v2071_v21, %v1216_v5  ;;  %v1208_v9 = vadd.f32 %v1207_v6, %v2061_v17 }
 0x228   : > { %v1603_v10 = vpop.f32.mrf.mxu1 }
 0x229   : > { %1270 = vst [vmem:[%s2077_s21 + $0x48] sm:$0xff] %v1254_v7  ;;  %v1259_v11 = vmax.f32 %v1243_v8, 0.0  ;;  %v1241_v12 = vadd.f32 %v2071_v21, %v1208_v9  ;;  %v1219_v13 = vadd.f32 %v1603_v10, %v2063_v18 }
 0x22a   : > { %v1210_v14 = vpop.f32.mrf.mxu1 }
 0x22b   : > { %1275 = vst [vmem:[%s2077_s21 + $0x70] sm:$0xff] %v1259_v11  ;;  %v1257_v15 = vmax.f32 %v1241_v12, 0.0  ;;  %v1244_v16 = vadd.f32 %v2071_v21, %v1219_v13  ;;  %v1211_v20 = vadd.f32 %v1210_v14, %v2065_v19 }
 0x22d   : > { %1273 = vst [vmem:[%s2077_s21 + $0x60] sm:$0xff] %v1257_v15  ;;  %v1260_v17 = vmax.f32 %v1244_v16, 0.0  ;;  %v1242_v22 = vadd.f32 %v2071_v21, %v1211_v20 }
 0x22f   : > { %1276 = vst [vmem:[%s2077_s21 + $0x78] sm:$0xff] %v1260_v17  ;;  %v1258_v18 = vmax.f32 %v1242_v22, 0.0 }
 0x231   : > { %1274 = vst [vmem:[%s2077_s21 + $0x68] sm:$0xff] %v1258_v18 }
 0x232   : > { %1728 = shalt.err (!%p1725_p5)
}
 0x233   : > { %s1729_s15 = scalar_lea.hbm %s2116_s17, 2048  ;;  %s1733_s21 = scalar_lea.hbm %s2176_s7, 4096 }
 0x234   : > { %p1730_p6 = scmp.ne.s32.totalorder %s2116_s17, %s1729_s15  ;;  %p1734_p10 = scmp.lt.s32.totalorder %s2116_s17, %s2176_s7 }
 0x235   : > { %p1735_p11 = scmp.lt.s32.totalorder %s1733_s21, %s1729_s15 }
 0x236   : > { %p1731_p7 = pnand %p1730_p6, %p1878_p4 }
 0x237   : > { %p1736_p12 = por %p1735_p11, %p1734_p10 }
 0x238   : > { %p1732_p9 = pneg %p1731_p7 }
 0x23a   : > { %p1737_p13 = pnand %p1736_p12, %p1732_p9 }
 0x23c   : > { %1740 = shalt.err (!%p1737_p13)
}
 0x23d   : > { %s1796_s30 = smov 128   ;;  %s1797_s8 = smov 8  }
 0x23e   : > { %1604 = dma.vmem_to_hbm [thread:$0]  (%p1878_p4), %s2118_s22, 2048, %s2116_s17, %s2124_s27, %s1796_s30, %s1796_s30, %s1797_s8  }
 0x23f PF: > { %p1610_p0 = scmp.ge.s32.totalorder %s1791_s29, 2  ;;  %s1306_s10 = sand.u32 1, %s1771_s24  }
 0x240   : > { %s1307_s12 = scalar_lea.sflag [#allocation4], %s1306_s10 }
 0x241   : > { %p1607_p1 = pnand %p1610_p0, %p1885_p8 }
 0x243   : > { %p1608_p2 = pneg %p1607_p1 }
 0x245   : > { %1766 = dma.done.wait (%p1608_p2), %s1307_s12, 2048  }
 0x246   : > { %1768 = vsyncadd (%p1608_p2), %s1307_s12, 4294965248  ;;  %s20_s29 = sadd.s32 1, %s1791_s29   ;;  %s2179_s24 = smov %s1775_s25 }
 0x247   : > { %p17_p3 = scmp.ge.s32.totalorder %s20_s29, 4   ;;  %s2180_s25 = smov %s1779_s26 }
 0x248   : > { %s2181_s26 = smov %s1891_s14  ;;  %s2182_s27 = smov %s1787_s28 }
 0x249   : > { %s2183_s28 = smov %s2185_s9  ;;  %19 = sbr.rel (!%p17_p3) target bundleno = 4 (0x4), region = 100 }
 0x24e   :  { %1312 = vsyncpa [#allocation4], 1 }
 0x24f   :  { %1314 = vsyncpa [#allocation4 + $0x1], 1 }

// kernel: tpu_custom_call.1
= control target key start
LH: loop header
LB: loop body
LE: loop exit
PB: predicated region body
PF: predicated region fallthrough
CT: control target
= control target key end

     0   :  { %12 = vsyncpa [#allocation4], 0  ;;  %s2169_s0 = inlined_call_operand.vmem [shape: bf16[256,256], index: 0, kind: input, shape index: {}]   ;;  %s2170_s1 = inlined_call_operand.vmem [shape: bf16[256,16], index: 1, kind: input, shape index: {}]   ;;  %s2171_s2 = inlined_call_operand.vmem [shape: bf16[256,16], index: 2, kind: input, shape index: {}]   ;;  %s2172_s3 = inlined_call_operand.vmem [shape: f32[256,1], index: 3, kind: input, shape index: {}]   ;;  %s2173_s4 = inlined_call_operand.vmem [shape: bf16[16,128], index: 4, kind: input, shape index: {}]   ;;  %s2174_s5 = inlined_call_operand.vmem [shape: bf16[16,128], index: 5, kind: input, shape index: {}]   ;;  %s2175_s6 = inlined_call_operand.vmem [shape: f32[1,128], index: 6, kind: input, shape index: {}]   ;;  %s2176_s7 = inlined_call_operand.hbm [shape: f32[256,128], index: 7, kind: output, shape index: {}]  }
   0x1   :  { %14 = vsyncpa [#allocation4 + $0x1], 0  ;;  %s1838_s24 = smov 0   ;;  %s1840_s25 = smov 0  }
   0x2   :  { %s1842_s26 = smov 0   ;;  %s1844_s27 = smov 0  }
   0x3   :  { %s1846_s28 = smov 0   ;;  %s1848_s29 = smov 0  }
   0x4 LB: > { %s1406_s30 = sadd.s32 4294967295, %s1791_s29   ;;  %s1407_s8 = sadd.s32 4294967294, %s1791_s29   ;;  %s1791_s29 = sphi %s1848_s29, %s20_s29   ;;  %s1787_s28 = sphi %s1846_s28, %s2183_s28   ;;  %s1783_s27 = sphi %s1844_s27, %s2182_s27   ;;  %s1779_s26 = sphi %s1842_s26, %s2181_s26   ;;  %s1775_s25 = sphi %s1840_s25, %s2180_s25   ;;  %s1771_s24 = sphi %s1838_s24, %s2179_s24  }
   0x5   : > { %s32_s9 = sadd.s32 1, %s1787_s28  ;;  %s208_s10 = sadd.s32 1, %s1779_s26 }
   0x6   : > { %p34_p0 = scmp.ge.s32.totalorder %s32_s9, 2  ;;  %p218_p1 = scmp.ne.s32.totalorder %s1779_s26, %s1775_s25 }
   0x7   : > { %p219_p2 = scmp.eq.s32.totalorder %s1406_s30, 1  ;;  %p224_p3 = scmp.ne.s32.totalorder %s1775_s25, %s1771_s24 }
   0x8   : > { %s2185_s9 = smov (%p34_p0, %s32_s9), 0  ;;  %p225_p5 = scmp.eq.s32.totalorder %s1407_s8, 1 }
   0x9   : > { %p1878_p4 = por %p219_p2, %p218_p1  ;;  %s205_s12 = ssub.s32 %s1787_s28, %s2185_s9 }
   0xa   : > { %p1411_p6 = scmp.ge.s32.totalorder %s1791_s29, 1  ;;  %p206_p7 = scmp.eq.s32.totalorder %s205_s12, 0 }
   0xb   : > { %p1885_p8 = por %p225_p5, %p224_p3  ;;  %p294_p9 = scmp.lt.s32.totalorder %s1791_s29, 3 }
   0xc   : > { %s1891_s14 = scalar_select %p206_p7, %s1779_s26, %s208_s10  }
   0xd   : > { %p295_p10 = pnand %p1411_p6, %p294_p9 }
   0xe   : > { %s1413_s17 = sshll.u32 (!%p295_p10), %s1783_s27, 4  ;;  %s1795_s10 = smov (!%p295_p10), [#allocation3]  }
   0xf   : > { %298 = sbr.rel (%p295_p10) target bundleno = 575 (0x23f), region = 48  ;;  %p348_p11 = scmp.lt.s32.totalorder (!%p295_p10), %s1413_s17, 31 }
  0x10   : > { %s1719_s12 = sshll.u32 (!%p295_p10), %s1795_s10, 4  ;;  %s1720_s12 = int_to_ptr.vmem [resolvable:$false] %s1719_s12 }
  0x11   : > { %s1721_s16 = scalar_lea.vmem (!%p295_p10), %s1720_s12, 4096 }
  0x14   : > { %v1665_v0 = vld [vmem:[%s2170_s1 + $0x78] sm:$0xff]   ;;  %v1667_v2 = vld [vmem:[%s2170_s1 + $0x70] sm:$0xff]   ;;  %v1793_v4 = vmov 0   ;;  %v1669_v5 = vld [vmem:[%s2170_s1 + $0x68] sm:$0xff]   ;;  %s2187_s17 = smov (!%p348_p11, %s1413_s17), 31  ;;  %vm382_vm0 = vcmask 130048  }
  0x15   : > { %v1666_v1 = vld [vmem:[%s2170_s1 + $0x38] sm:$0xff]   ;;  %1486 = vmatprep.subr.bf16.mxu0 %v1665_v0  ;;  %v1668_v3 = vld [vmem:[%s2170_s1 + $0x30] sm:$0xff]   ;;  %1663 = vset.pattern.permute.xlu0 %v1793_v4  ;;  %v1670_v6 = vld [vmem:[%s2170_s1 + $0x28] sm:$0xff]   ;;  %s1484_s20 = sshll.u32 %s2187_s17, 3  ;;  %v1794_v49 = vmov 0.0  }
  0x16   : > { %1487 = vmatpush3.bf16.msra.mxu0 %v1666_v1  ;;  %1664 = vset.pattern.permute.xlu1 %v1793_v4  ;;  %v1671_v7 = vld [vmem:[%s2170_s1 + $0x60] sm:$0xff]   ;;  %v1673_v9 = vld [vmem:[%s2170_s1 + $0x58] sm:$0xff]   ;;  %s1927_s8 = scalar_lea.vmem %s2169_s0, %s1484_s20  ;;  %v1675_v11 = vld [vmem:[%s2170_s1 + $0x50] sm:$0xff]   ;;  %s1948_s15 = scalar_lea.vmem %s2172_s3, %s1484_s20  ;;  %383 = vst.msk [vmem:[#allocation2] sm:$0xff] %vm382_vm0, %v1794_v49 }
  0x17   : > { %1488 = vmatprep.subr.bf16.mxu0 %v1667_v2  ;;  %v1672_v8 = vld [vmem:[%s2170_s1 + $0x20] sm:$0xff]   ;;  %v1674_v10 = vld [vmem:[%s2170_s1 + $0x18] sm:$0xff]   ;;  %v1676_v13 = vld [vmem:[%s2170_s1 + $0x10] sm:$0xff]   ;;  %s1417_s20 = sshll.u32 %s2187_s17, 2  ;;  %384 = vst.msk [vmem:[#allocation2 + $0x8] sm:$0xff] %vm382_vm0, %v1794_v49 }
  0x18   : > { %v1683_v12 = vld [vmem:[%s1927_s8 + $0x4] ss:$8 sps:$4 sm:$0xff]   ;;  %v790_v19 = vld [vmem:[%s1948_s15 + $0x10] sm:$0xff]  ;;  %v791_v21 = vld [vmem:[%s1948_s15 + $0x18] sm:$0xff]  ;;  %s1968_s30 = scalar_lea.vmem %s2171_s2, %s1417_s20  ;;  %385 = vst.msk [vmem:[#allocation2 + $0x10] sm:$0xff] %vm382_vm0, %v1794_v49  ;;  %s1485_s20 = sshll.u32 %s1783_s27, 11 }
  0x19   : > { %671 = vmatprep.mubr.bf16.mxu0 %v1683_v12  ;;  %v1677_v14 = vld [vmem:[%s2170_s1 + $0x48] sm:$0xff]   ;;  %v1679_v16 = vld [vmem:[%s2170_s1 + $0x40] sm:$0xff]   ;;  %816 = vperm.xlu1 %1664, %v790_v19   ;;  %v1684_v23 = vld [vmem:[%s1927_s8 + $0x14] ss:$8 sps:$4 sm:$0xff]   ;;  %386 = vst.msk [vmem:[#allocation2 + $0x18] sm:$0xff] %vm382_vm0, %v1794_v49  ;;  %s2116_s17 = scalar_lea.hbm %s2176_s7, %s1485_s20 }
  0x1a   : > { %1489 = vmatpush3.bf16.msra.mxu0 %v1668_v3  ;;  %v1678_v15 = vld [vmem:[%s2170_s1 + $0x8] sm:$0xff]   ;;  %v788_v17 = vld [vmem:[%s1948_s15] sm:$0xff]  ;;  %v794_v26 = vld [vmem:[%s1948_s15 + $0x30] sm:$0xff]  ;;  %387 = vst.msk [vmem:[#allocation2 + $0x20] sm:$0xff] %vm382_vm0, %v1794_v49 }
  0x1b   : > { %1490 = vmatprep.subr.bf16.mxu0 %v1669_v5  ;;  %v1680_v18 = vld [vmem:[%s2170_s1] sm:$0xff]   ;;  %806 = vperm.xlu0 %1663, %v788_v17   ;;  %v789_v20 = vld [vmem:[%s1948_s15 + $0x8] sm:$0xff]  ;;  %v795_v27 = vld [vmem:[%s1948_s15 + $0x38] sm:$0xff]  ;;  %388 = vst.msk [vmem:[#allocation2 + $0x28] sm:$0xff] %vm382_vm0, %v1794_v49 }
  0x1c   : > { %v1681_v22 = vld [vmem:[%s1927_s8] ss:$8 sps:$4 sm:$0xff]   ;;  %v1686_v28 = vld [vmem:[%s1927_s8 + $0x10] ss:$8 sps:$4 sm:$0xff]   ;;  %v1687_v29 = vld [vmem:[%s1927_s8 + $0x24] ss:$8 sps:$4 sm:$0xff]  }
  0x1d   : > { %v792_v24 = vld [vmem:[%s1948_s15 + $0x20] sm:$0xff]  ;;  %v793_v25 = vld [vmem:[%s1948_s15 + $0x28] sm:$0xff]  ;;  %821 = vperm.xlu1 %1664, %v791_v21   ;;  %v798_v32 = vld [vmem:[%s1948_s15 + $0x50] sm:$0xff]  ;;  %389 = vst.msk [vmem:[#allocation2 + $0x30] sm:$0xff] %vm382_vm0, %v1794_v49 }
  0x1e   : > { %1491 = vmatpush3.bf16.msra.mxu0 %v1670_v6  ;;  %v796_v30 = vld [vmem:[%s1948_s15 + $0x40] sm:$0xff]  ;;  %v797_v31 = vld [vmem:[%s1948_s15 + $0x48] sm:$0xff]  ;;  %v799_v33 = vld [vmem:[%s1948_s15 + $0x58] sm:$0xff]  ;;  %390 = vst.msk [vmem:[#allocation2 + $0x38] sm:$0xff] %vm382_vm0, %v1794_v49 }
  0x1f   : > { %1492 = vmatprep.subr.bf16.mxu0 %v1671_v7  ;;  %811 = vperm.xlu0 %1663, %v789_v20   ;;  %v1689_v34 = vld [vmem:[%s1927_s8 + $0x20] ss:$8 sps:$4 sm:$0xff]   ;;  %v1690_v35 = vld [vmem:[%s1927_s8 + $0x34] ss:$8 sps:$4 sm:$0xff]   ;;  %v1692_v40 = vld [vmem:[%s1927_s8 + $0x30] ss:$8 sps:$4 sm:$0xff]  }
  0x20   : > { %v800_v36 = vld [vmem:[%s1948_s15 + $0x60] sm:$0xff]  ;;  %v801_v37 = vld [vmem:[%s1948_s15 + $0x68] sm:$0xff]  ;;  %v802_v38 = vld [vmem:[%s1948_s15 + $0x70] sm:$0xff]  ;;  %391 = vst.msk [vmem:[#allocation2 + $0x40] sm:$0xff] %vm382_vm0, %v1794_v49 }
  0x21   : > { %831 = vperm.xlu1 %1664, %v793_v25   ;;  %v803_v39 = vld [vmem:[%s1948_s15 + $0x78] sm:$0xff]  ;;  %v1693_v41 = vld [vmem:[%s1927_s8 + $0x44] ss:$8 sps:$4 sm:$0xff]   ;;  %v1695_v42 = vld [vmem:[%s1927_s8 + $0x40] ss:$8 sps:$4 sm:$0xff]   ;;  %392 = vst.msk [vmem:[#allocation2 + $0x48] sm:$0xff] %vm382_vm0, %v1794_v49 }
  0x22   : > { %1493 = vmatpush3.bf16.msra.mxu0 %v1672_v8  ;;  %v1696_v43 = vld [vmem:[%s1927_s8 + $0x54] ss:$8 sps:$4 sm:$0xff]   ;;  %v1698_v44 = vld [vmem:[%s1927_s8 + $0x50] ss:$8 sps:$4 sm:$0xff]   ;;  %v1699_v45 = vld [vmem:[%s1927_s8 + $0x64] ss:$8 sps:$4 sm:$0xff]  }
  0x23   : > { %1494 = vmatprep.subr.bf16.mxu0 %v1673_v9  ;;  %826 = vperm.xlu0 %1663, %v792_v24   ;;  %v1701_v46 = vld [vmem:[%s1927_s8 + $0x60] ss:$8 sps:$4 sm:$0xff]   ;;  %v1702_v47 = vld [vmem:[%s1927_s8 + $0x74] ss:$8 sps:$4 sm:$0xff]   ;;  %v1704_v48 = vld [vmem:[%s1927_s8 + $0x70] ss:$8 sps:$4 sm:$0xff]  }
  0x24   : > { %393 = vst.msk [vmem:[#allocation2 + $0x50] sm:$0xff] %vm382_vm0, %v1794_v49  ;;  %394 = vst.msk [vmem:[#allocation2 + $0x58] sm:$0xff] %vm382_vm0, %v1794_v49  ;;  %v1705_v50 = vld [vmem:[%s2174_s5] sm:$0xff]   ;;  %v400_v58 = vld [vmem:[#allocation2 + $0x8] sm:$0xff]  ;;  %s343_s15 = sand.u32 1, %s1775_s25  }
  0x25   : > { %841 = vperm.xlu1 %1664, %v795_v27   ;;  %395 = vst.msk [vmem:[#allocation2 + $0x60] sm:$0xff] %vm382_vm0, %v1794_v49  ;;  %396 = vst.msk [vmem:[#allocation2 + $0x68] sm:$0xff] %vm382_vm0, %v1794_v49  ;;  %1568 = vmatprep.subr.bf16.mxu1 %v1705_v50  ;;  %v2015_v51 = vld [vmem:[%s2173_s4] sm:$0xff]   ;;  %v401_v63 = vld [vmem:[#allocation2 + $0x10] sm:$0xff]  ;;  %s1412_s19 = sshll.u32 %s343_s15, 7  ;;  %s2124_s27 = scalar_lea.sflag [#allocation4], %s343_s15 }
  0x26   : > { %1495 = vmatpush3.bf16.msra.mxu0 %v1674_v10  ;;  %397 = vst.msk [vmem:[#allocation2 + $0x70] sm:$0xff] %vm382_vm0, %v1794_v49  ;;  %398 = vst.msk [vmem:[#allocation2 + $0x78] sm:$0xff] %vm382_vm0, %v1794_v49  ;;  %1569 = vmatpush3.bf16.msra.mxu1 %v1705_v50  ;;  %v399_v53 = vld [vmem:[#allocation2] sm:$0xff]  ;;  %v402_v5 = vld [vmem:[#allocation2 + $0x18] sm:$0xff]  ;;  %s2077_s21 = scalar_lea.vmem [#allocation3], %s1412_s19 }
  0x27   : > { %1496 = vmatprep.subr.bf16.mxu0 %v1675_v11  ;;  %836 = vperm.xlu0 %1663, %v794_v26   ;;  %s1291_s22 = sshll.u32 %s2077_s21, 4  ;;  %s2118_s22 = int_to_ptr.vmem [resolvable:$true] %s1291_s22 }
  0x28   : > { %1586 = vmatprep.subr.bf16.mxu1 %v2015_v51  ;;  %s1715_s8 = scalar_lea.vmem %s2118_s22, 2048  ;;  %p1722_p1 = scmp.lt.s32.totalorder %s2118_s22, %s1720_s12 }
  0x29   : > { %851 = vperm.xlu1 %1664, %v797_v31   ;;  %p1716_p12 = scmp.ne.s32.totalorder %s2118_s22, %s1715_s8  ;;  %p1723_p2 = scmp.lt.s32.totalorder %s1721_s16, %s1715_s8 }
  0x2a   : > { %1497 = vmatpush3.bf16.msra.mxu0 %v1676_v13  ;;  %v403_v13 = vld [vmem:[#allocation2 + $0x20] sm:$0xff] }
  0x2b   : > { %1498 = vmatprep.subr.bf16.mxu0 %v1677_v14  ;;  %846 = vperm.xlu0 %1663, %v796_v30   ;;  %v405_v30 = vld [vmem:[#allocation2 + $0x30] sm:$0xff]  ;;  %p1717_p13 = pnand %p1716_p12, %p1878_p4  ;;  %p1724_p3 = por %p1723_p2, %p1722_p1 }
  0x2d   : > { %861 = vperm.xlu1 %1664, %v799_v33   ;;  %p1718_p0 = pneg %p1717_p13 }
  0x2e   : > { %1499 = vmatpush3.bf16.msra.mxu0 %v1678_v15 }
  0x2f   : > { %1500 = vmatprep.subr.bf16.mxu0 %v1679_v16  ;;  %856 = vperm.xlu0 %1663, %v798_v32   ;;  %p1725_p5 = pnand %p1724_p3, %p1718_p0 }
  0x31   : > { %871 = vperm.xlu1 %1664, %v801_v37  }
  0x32   : > { %1501 = vmatpush3.bf16.msra.mxu0 %v1680_v18 }
  0x33   : > { %866 = vperm.xlu0 %1663, %v800_v36  }
  0x35   : > { %672 = vmatmul.mubr.bf16.vlgmr.msra.gmra.mxu0 %v1681_v22  ;;  %881 = vperm.xlu1 %1664, %v803_v39   ;;  %v404_v22 = vld [vmem:[#allocation2 + $0x28] sm:$0xff] }
  0x36   : > { %679 = vmatprep.mubr.bf16.mxu0 %v1684_v23 }
  0x37   : > { %876 = vperm.xlu0 %1663, %v802_v38   ;;  %v406_v38 = vld [vmem:[#allocation2 + $0x38] sm:$0xff] }
  0x3d   : > { %680 = vmatmul.mubr.bf16.gmra.mxu0 %v1686_v28 }
  0x3e   : > { %687 = vmatprep.mubr.bf16.mxu0 %v1687_v29 }
  0x45   : > { %688 = vmatmul.mubr.bf16.gmra.mxu0 %v1689_v34 }
  0x46   : > { %695 = vmatprep.mubr.bf16.mxu0 %v1690_v35 }
  0x4d   : > { %696 = vmatmul.mubr.bf16.gmra.mxu0 %v1692_v40 }
  0x4e   : > { %703 = vmatprep.mubr.bf16.mxu0 %v1693_v41 }
  0x55   : > { %704 = vmatmul.mubr.bf16.gmra.mxu0 %v1695_v42 }
  0x56   : > { %711 = vmatprep.mubr.bf16.mxu0 %v1696_v43 }
  0x5d   : > { %712 = vmatmul.mubr.bf16.gmra.mxu0 %v1698_v44 }
  0x5e   : > { %719 = vmatprep.mubr.bf16.mxu0 %v1699_v45 }
  0x65   : > { %720 = vmatmul.mubr.bf16.gmra.mxu0 %v1701_v46 }
  0x66   : > { %727 = vmatprep.mubr.bf16.mxu0 %v1702_v47  ;;  %v407_v47 = vld [vmem:[#allocation2 + $0x40] sm:$0xff] }
  0x6d   : > { %728 = vmatmul.mubr.bf16.gmra.mxu0 %v1704_v48 }
  0x94   : > { %v817_v18 = vpop.permute.xlu1 %816 }
  0x96   : > { %v807_v1 = vpop.permute.xlu0 %806 }
  0x98   : > { %v822_v28 = vpop.permute.xlu1 %821 }
  0x9a   : > { %v812_v10 = vpop.permute.xlu0 %811 }
  0x9c   : > { %v832_v45 = vpop.permute.xlu1 %831 }
  0x9e   : > { %v827_v43 = vpop.permute.xlu0 %826 }
  0xf5   : > { %v1502_v52 = vpop.f32.mrf.mxu0 }
  0xf7   : > { %v1503_v54 = vpop.f32.mrf.mxu0 }
  0xf8   : > { %v1504_v55 = vadd.f32 %v1503_v54, %v1502_v52 }
  0xf9   : > { %v1505_v56 = vpop.f32.mrf.mxu0 }
  0xfa   : > { %v736_v57 = vadd.f32 %v1504_v55, %v399_v53 }
  0xfb   : > { %v1506_v59 = vpop.f32.mrf.mxu0 }
  0xfc   : > { %753 = vst.msk [vmem:[#allocation2] sm:$0xff] %vm382_vm0, %v736_v57  ;;  %v1507_v60 = vadd.f32 %v1506_v59, %v1505_v56  ;;  %v408_v56 = vld [vmem:[#allocation2 + $0x48] sm:$0xff] }
  0xfd   : > { %v1508_v61 = vpop.f32.mrf.mxu0 }
  0xfe   : > { %v737_v62 = vadd.f32 %v1507_v60, %v400_v58  ;;  %v837_v60 = vpop.permute.xlu0 %836 }
  0xff   : > { %v1509_v0 = vpop.f32.mrf.mxu0 }
 0x100   : > { %754 = vst.msk [vmem:[#allocation2 + $0x8] sm:$0xff] %vm382_vm0, %v737_v62  ;;  %v1510_v2 = vadd.f32 %v1509_v0, %v1508_v61  ;;  %v842_v62 = vpop.permute.xlu1 %841 }
 0x101   : > { %v1511_v3 = vpop.f32.mrf.mxu0 }
 0x102   : > { %v738_v4 = vadd.f32 %v1510_v2, %v401_v63  ;;  %v409_v63 = vld [vmem:[#allocation2 + $0x50] sm:$0xff] }
 0x103   : > { %v1512_v6 = vpop.f32.mrf.mxu0  ;;  %v772_v8 = vld [vmem:[#allocation2] sm:$0xff] }
 0x104   : > { %755 = vst.msk [vmem:[#allocation2 + $0x10] sm:$0xff] %vm382_vm0, %v738_v4  ;;  %v1513_v7 = vadd.f32 %v1512_v6, %v1511_v3  ;;  %v884_v15 = vmul.f32 %v807_v1, %v772_v8  ;;  %v410_v8 = vld [vmem:[#allocation2 + $0x58] sm:$0xff] }
 0x105   : > { %v1514_v9 = vpop.f32.mrf.mxu0 }
 0x106   : > { %v739_v11 = vadd.f32 %v1513_v7, %v402_v5 }
 0x107   : > { %v773_v12 = vld [vmem:[#allocation2 + $0x8] sm:$0xff]  ;;  %v1515_v14 = vpop.f32.mrf.mxu0 }
 0x108   : > { %756 = vst.msk [vmem:[#allocation2 + $0x18] sm:$0xff] %vm382_vm0, %v739_v11  ;;  %v885_v16 = vmul.f32 %v812_v10, %v773_v12  ;;  %v1516_v17 = vadd.f32 %v1515_v14, %v1514_v9 }
 0x109   : > { %v1517_v19 = vpop.f32.mrf.mxu0 }
 0x10a   : > { %v740_v20 = vadd.f32 %v1516_v17, %v403_v13  ;;  %v918_v21 = vpack.c.bf16 %v885_v16, %v884_v15  ;;  %v847_v13 = vpop.permute.xlu0 %846  ;;  %v852_v15 = vpop.permute.xlu1 %851  ;;  %v411_v16 = vld [vmem:[#allocation2 + $0x60] sm:$0xff] }
 0x10b   : > { %v1518_v23 = vpop.f32.mrf.mxu0  ;;  %v774_v25 = vld [vmem:[#allocation2 + $0x10] sm:$0xff] }
 0x10c   : > { %757 = vst.msk [vmem:[#allocation2 + $0x20] sm:$0xff] %vm382_vm0, %v740_v20  ;;  %v1519_v24 = vadd.f32 %v1518_v23, %v1517_v19  ;;  %1570 = vmatprep.mubr.msk.bf16.mxu1 %vm382_vm0, %v918_v21  ;;  %v886_v32 = vmul.f32 %v817_v18, %v774_v25  ;;  %v412_v25 = vld [vmem:[#allocation2 + $0x68] sm:$0xff] }
 0x10d   : > { %v1520_v26 = vpop.f32.mrf.mxu0 }
 0x10e   : > { %v741_v27 = vadd.f32 %v1519_v24, %v404_v22 }
 0x10f   : > { %v775_v29 = vld [vmem:[#allocation2 + $0x18] sm:$0xff]  ;;  %v1521_v31 = vpop.f32.mrf.mxu0 }
 0x110   : > { %v887_v33 = vmul.f32 %v822_v28, %v775_v29  ;;  %758 = vst.msk [vmem:[#allocation2 + $0x28] sm:$0xff] %vm382_vm0, %v741_v27  ;;  %v1522_v34 = vadd.f32 %v1521_v31, %v1520_v26 }
 0x111   : > { %v1523_v35 = vpop.f32.mrf.mxu0 }
 0x112   : > { %v919_v36 = vpack.c.bf16 %v887_v33, %v886_v32  ;;  %v742_v37 = vadd.f32 %v1522_v34, %v405_v30  ;;  %v857_v30 = vpop.permute.xlu0 %856  ;;  %v862_v32 = vpop.permute.xlu1 %861  ;;  %v413_v33 = vld [vmem:[#allocation2 + $0x70] sm:$0xff] }
 0x113   : > { %v1524_v39 = vpop.f32.mrf.mxu0  ;;  %v776_v41 = vld [vmem:[#allocation2 + $0x20] sm:$0xff] }
 0x114   : > { %759 = vst.msk [vmem:[#allocation2 + $0x30] sm:$0xff] %vm382_vm0, %v742_v37  ;;  %v1525_v40 = vadd.f32 %v1524_v39, %v1523_v35  ;;  %1571 = vmatmul.mubr.msk.bf16.vlgmr.msra.gmra.mxu1 %vm382_vm0, %v919_v36  ;;  %v888_v49 = vmul.f32 %v827_v43, %v776_v41 }
 0x115   : > { %v1526_v42 = vpop.f32.mrf.mxu0  ;;  %1587 = vmatpush3.bf16.msra.mxu1 %v2015_v51 }
 0x116   : > { %v743_v44 = vadd.f32 %v1525_v40, %v406_v38 }
 0x117   : > { %v777_v46 = vld [vmem:[#allocation2 + $0x28] sm:$0xff]  ;;  %v1527_v48 = vpop.f32.mrf.mxu0 }
 0x118   : > { %v889_v50 = vmul.f32 %v832_v45, %v777_v46  ;;  %760 = vst.msk [vmem:[#allocation2 + $0x38] sm:$0xff] %vm382_vm0, %v743_v44  ;;  %v1528_v52 = vadd.f32 %v1527_v48, %v1526_v42  ;;  %v414_v42 = vld [vmem:[#allocation2 + $0x78] sm:$0xff]  ;;  %v872_v48 = vpop.permute.xlu1 %871 }
 0x119   : > { %v1529_v53 = vpop.f32.mrf.mxu0 }
 0x11a   : > { %v920_v54 = vpack.c.bf16 %v889_v50, %v888_v49  ;;  %v744_v55 = vadd.f32 %v1528_v52, %v407_v47  ;;  %v867_v47 = vpop.permute.xlu0 %866 }
 0x11b   : > { %v1530_v57 = vpop.f32.mrf.mxu0  ;;  %v778_v51 = vld [vmem:[#allocation2 + $0x30] sm:$0xff] }
 0x11c   : > { %761 = vst.msk [vmem:[#allocation2 + $0x40] sm:$0xff] %vm382_vm0, %v744_v55  ;;  %v1531_v58 = vadd.f32 %v1530_v57, %v1529_v53  ;;  %1574 = vmatprep.mubr.msk.bf16.mxu1 %vm382_vm0, %v920_v54  ;;  %v890_v2 = vmul.f32 %v837_v60, %v778_v51 }
 0x11d   : > { %v1532_v59 = vpop.f32.mrf.mxu0 }
 0x11e   : > { %v745_v61 = vadd.f32 %v1531_v58, %v408_v56  ;;  %v877_v55 = vpop.permute.xlu0 %876  ;;  %v882_v56 = vpop.permute.xlu1 %881 }
 0x11f   : > { %v1533_v0 = vpop.f32.mrf.mxu0  ;;  %v779_v1 = vld [vmem:[#allocation2 + $0x38] sm:$0xff] }
 0x120   : > { %762 = vst.msk [vmem:[#allocation2 + $0x48] sm:$0xff] %vm382_vm0, %v745_v61  ;;  %v1534_v3 = vadd.f32 %v1533_v0, %v1532_v59  ;;  %v891_v4 = vmul.f32 %v842_v62, %v779_v1  ;;  %v1707_v59 = vld [vmem:[%s1968_s30] sm:$0xff]   ;;  %v1708_v61 = vld [vmem:[%s1968_s30 + $0x8] sm:$0xff]   ;;  %v1709_v62 = vld [vmem:[%s1968_s30 + $0x10] sm:$0xff]  }
 0x121   : > { %v1535_v5 = vpop.f32.mrf.mxu0  ;;  %v1711_v0 = vld [vmem:[%s1968_s30 + $0x20] sm:$0xff]   ;;  %v1712_v1 = vld [vmem:[%s1968_s30 + $0x28] sm:$0xff]  }
 0x122   : > { %v746_v6 = vadd.f32 %v1534_v3, %v409_v63  ;;  %v921_v7 = vpack.c.bf16 %v891_v4, %v890_v2  ;;  %v1710_v63 = vld [vmem:[%s1968_s30 + $0x18] sm:$0xff]   ;;  %v1713_v2 = vld [vmem:[%s1968_s30 + $0x30] sm:$0xff]  }
 0x123   : > { %v1536_v9 = vpop.f32.mrf.mxu0  ;;  %v780_v12 = vld [vmem:[#allocation2 + $0x40] sm:$0xff]  ;;  %v1714_v3 = vld [vmem:[%s1968_s30 + $0x38] sm:$0xff]  }
 0x124   : > { %763 = vst.msk [vmem:[#allocation2 + $0x50] sm:$0xff] %vm382_vm0, %v746_v6  ;;  %v1537_v10 = vadd.f32 %v1536_v9, %v1535_v5  ;;  %1575 = vmatmul.mubr.msk.bf16.gmra.mxu1 %vm382_vm0, %v921_v7  ;;  %v892_v20 = vmul.f32 %v847_v13, %v780_v12 }
 0x125   : > { %v1538_v11 = vpop.f32.mrf.mxu0 }
 0x126   : > { %v747_v14 = vadd.f32 %v1537_v10, %v410_v8 }
 0x127   : > { %v1539_v17 = vpop.f32.mrf.mxu0  ;;  %v781_v18 = vld [vmem:[#allocation2 + $0x48] sm:$0xff] }
 0x128   : > { %764 = vst.msk [vmem:[#allocation2 + $0x58] sm:$0xff] %vm382_vm0, %v747_v14  ;;  %v1540_v19 = vadd.f32 %v1539_v17, %v1538_v11  ;;  %v893_v21 = vmul.f32 %v852_v15, %v781_v18 }
 0x129   : > { %v1541_v22 = vpop.f32.mrf.mxu0 }
 0x12a   : > { %v748_v23 = vadd.f32 %v1540_v19, %v411_v16  ;;  %v922_v24 = vpack.c.bf16 %v893_v21, %v892_v20  ;;  %v2071_v21 = vld [vmem:[%s2175_s6] ss:$0 sm:$0xff] }
 0x12b   : > { %v1542_v26 = vpop.f32.mrf.mxu0  ;;  %v782_v29 = vld [vmem:[#allocation2 + $0x50] sm:$0xff] }
 0x12c   : > { %765 = vst.msk [vmem:[#allocation2 + $0x60] sm:$0xff] %vm382_vm0, %v748_v23  ;;  %v1543_v27 = vadd.f32 %v1542_v26, %v1541_v22  ;;  %1578 = vmatprep.mubr.msk.bf16.mxu1 %vm382_vm0, %v922_v24  ;;  %v894_v37 = vmul.f32 %v857_v30, %v782_v29 }
 0x12d   : > { %v1544_v28 = vpop.f32.mrf.mxu0 }
 0x12e   : > { %v749_v31 = vadd.f32 %v1543_v27, %v412_v25 }
 0x12f   : > { %v1545_v34 = vpop.f32.mrf.mxu0  ;;  %v783_v35 = vld [vmem:[#allocation2 + $0x58] sm:$0xff] }
 0x130   : > { %766 = vst.msk [vmem:[#allocation2 + $0x68] sm:$0xff] %vm382_vm0, %v749_v31  ;;  %v1546_v36 = vadd.f32 %v1545_v34, %v1544_v28  ;;  %v895_v38 = vmul.f32 %v862_v32, %v783_v35 }
 0x131   : > { %v1547_v39 = vpop.f32.mrf.mxu0 }
 0x132   : > { %v750_v40 = vadd.f32 %v1546_v36, %v413_v33  ;;  %v923_v41 = vpack.c.bf16 %v895_v38, %v894_v37 }
 0x133   : > { %v1548_v43 = vpop.f32.mrf.mxu0  ;;  %v784_v45 = vld [vmem:[#allocation2 + $0x60] sm:$0xff] }
 0x134   : > { %767 = vst.msk [vmem:[#allocation2 + $0x70] sm:$0xff] %vm382_vm0, %v750_v40  ;;  %v1549_v44 = vadd.f32 %v1548_v43, %v1547_v39  ;;  %1579 = vmatmul.mubr.msk.bf16.gmra.mxu1 %vm382_vm0, %v923_v41  ;;  %v896_v50 = vmul.f32 %v867_v47, %v784_v45 }
 0x136   : > { %v751_v46 = vadd.f32 %v1549_v44, %v414_v42 }
 0x137   : > { %v785_v49 = vld [vmem:[#allocation2 + $0x68] sm:$0xff] }
 0x138   : > { %768 = vst.msk [vmem:[#allocation2 + $0x78] sm:$0xff] %vm382_vm0, %v751_v46  ;;  %v897_v52 = vmul.f32 %v872_v48, %v785_v49 }
 0x13a   : > { %v924_v53 = vpack.c.bf16 %v897_v52, %v896_v50 }
 0x13b   : > { %v786_v54 = vld [vmem:[#allocation2 + $0x70] sm:$0xff] }
 0x13c   : > { %1582 = vmatprep.mubr.msk.bf16.mxu1 %vm382_vm0, %v924_v53  ;;  %v898_v58 = vmul.f32 %v877_v55, %v786_v54 }
 0x13f   : > { %v787_v57 = vld [vmem:[#allocation2 + $0x78] sm:$0xff] }
 0x140   : > { %v899_v51 = vmul.f32 %v882_v56, %v787_v57 }
 0x142   : > { %v925_v60 = vpack.c.bf16 %v899_v51, %v898_v58 }
 0x144   : > { %1583 = vmatmul.mubr.msk.bf16.gmra.mxu1 %vm382_vm0, %v925_v60 }
 0x145   : > { %1588 = vmatprep.mubr.msk.bf16.mxu1 %vm382_vm0, %v1707_v59 }
 0x14c   : > { %1589 = vmatmul.mubr.msk.bf16.vlgmr.msra.gmra.mxu1 %vm382_vm0, %v1708_v61 }
 0x14d   : > { %1592 = vmatprep.mubr.msk.bf16.mxu1 %vm382_vm0, %v1709_v62 }
 0x154   : > { %1593 = vmatmul.mubr.msk.bf16.gmra.mxu1 %vm382_vm0, %v1710_v63 }
 0x155   : > { %1596 = vmatprep.mubr.msk.bf16.mxu1 %vm382_vm0, %v1711_v0 }
 0x15c   : > { %1597 = vmatmul.mubr.msk.bf16.gmra.mxu1 %vm382_vm0, %v1712_v1 }
 0x15d   : > { %1600 = vmatprep.mubr.msk.bf16.mxu1 %vm382_vm0, %v1713_v2 }
 0x164   : > { %1601 = vmatmul.mubr.msk.bf16.gmra.mxu1 %vm382_vm0, %v1714_v3 }
 0x1d4   : > { %v1572_v4 = vpop.f32.mrf.mxu1 }
 0x1d6   : > { %v992_v5 = vpop.f32.mrf.mxu1 }
 0x1d8   : > { %v1573_v6 = vpop.f32.mrf.mxu1 }
 0x1da   : > { %v995_v7 = vpop.f32.mrf.mxu1 }
 0x1e4   : > { %v1576_v8 = vpop.f32.mrf.mxu1 }
 0x1e6   : > { %v1008_v9 = vpop.f32.mrf.mxu1 }
 0x1e8   : > { %v1577_v10 = vpop.f32.mrf.mxu1 }
 0x1ea   : > { %v1011_v11 = vpop.f32.mrf.mxu1 }
 0x1f4   : > { %v1580_v12 = vpop.f32.mrf.mxu1 }
 0x1f6   : > { %v1024_v13 = vpop.f32.mrf.mxu1 }
 0x1f8   : > { %v1581_v14 = vpop.f32.mrf.mxu1 }
 0x1fa   : > { %v1027_v15 = vpop.f32.mrf.mxu1 }
 0x204   : > { %v2059_v16 = vpop.f32.mrf.mxu1 }
 0x206   : > { %v2061_v17 = vpop.f32.mrf.mxu1 }
 0x208   : > { %v2063_v18 = vpop.f32.mrf.mxu1 }
 0x20a   : > { %v2065_v19 = vpop.f32.mrf.mxu1 }
 0x20c   : > { %v1590_v20 = vpop.f32.mrf.mxu1 }
 0x20d   : > { %v1168_v22 = vadd.f32 %v1590_v20, %v1572_v4 }
 0x20e   : > { %v1159_v23 = vpop.f32.mrf.mxu1 }
 0x20f   : > { %v1231_v24 = vadd.f32 %v2071_v21, %v1168_v22  ;;  %v1160_v25 = vadd.f32 %v1159_v23, %v992_v5 }
 0x210   : > { %v1591_v26 = vpop.f32.mrf.mxu1 }
 0x211   : > { %v1247_v27 = vmax.f32 %v1231_v24, 0.0  ;;  %v1229_v28 = vadd.f32 %v2071_v21, %v1160_v25  ;;  %v1171_v29 = vadd.f32 %v1591_v26, %v1573_v6 }
 0x212   : > { %v1162_v30 = vpop.f32.mrf.mxu1 }
 0x213   : > { %1263 = vst [vmem:[%s2077_s21 + $0x10] sm:$0xff] %v1247_v27  ;;  %v1245_v31 = vmax.f32 %v1229_v28, 0.0  ;;  %v1232_v32 = vadd.f32 %v2071_v21, %v1171_v29  ;;  %v1163_v33 = vadd.f32 %v1162_v30, %v995_v7 }
 0x214   : > { %v1594_v34 = vpop.f32.mrf.mxu1 }
 0x215   : > { %1261 = vst [vmem:[%s2077_s21] sm:$0xff] %v1245_v31  ;;  %v1248_v35 = vmax.f32 %v1232_v32, 0.0  ;;  %v1230_v36 = vadd.f32 %v2071_v21, %v1163_v33  ;;  %v1184_v37 = vadd.f32 %v1594_v34, %v1576_v8 }
 0x216   : > { %v1175_v38 = vpop.f32.mrf.mxu1 }
 0x217   : > { %1264 = vst [vmem:[%s2077_s21 + $0x18] sm:$0xff] %v1248_v35  ;;  %v1246_v39 = vmax.f32 %v1230_v36, 0.0  ;;  %v1235_v40 = vadd.f32 %v2071_v21, %v1184_v37  ;;  %v1176_v41 = vadd.f32 %v1175_v38, %v1008_v9 }
 0x218   : > { %v1595_v42 = vpop.f32.mrf.mxu1 }
 0x219   : > { %1262 = vst [vmem:[%s2077_s21 + $0x8] sm:$0xff] %v1246_v39  ;;  %v1251_v43 = vmax.f32 %v1235_v40, 0.0  ;;  %v1233_v44 = vadd.f32 %v2071_v21, %v1176_v41  ;;  %v1187_v45 = vadd.f32 %v1595_v42, %v1577_v10 }
 0x21a   : > { %v1178_v46 = vpop.f32.mrf.mxu1 }
 0x21b   : > { %1267 = vst [vmem:[%s2077_s21 + $0x30] sm:$0xff] %v1251_v43  ;;  %v1249_v47 = vmax.f32 %v1233_v44, 0.0  ;;  %v1236_v48 = vadd.f32 %v2071_v21, %v1187_v45  ;;  %v1179_v49 = vadd.f32 %v1178_v46, %v1011_v11 }
 0x21c   : > { %v1598_v50 = vpop.f32.mrf.mxu1 }
 0x21d   : > { %1265 = vst [vmem:[%s2077_s21 + $0x20] sm:$0xff] %v1249_v47  ;;  %v1252_v52 = vmax.f32 %v1236_v48, 0.0  ;;  %v1234_v53 = vadd.f32 %v2071_v21, %v1179_v49  ;;  %v1200_v54 = vadd.f32 %v1598_v50, %v1580_v12 }
 0x21e   : > { %v1191_v55 = vpop.f32.mrf.mxu1 }
 0x21f   : > { %1268 = vst [vmem:[%s2077_s21 + $0x38] sm:$0xff] %v1252_v52  ;;  %v1250_v56 = vmax.f32 %v1234_v53, 0.0  ;;  %v1239_v57 = vadd.f32 %v2071_v21, %v1200_v54  ;;  %v1192_v58 = vadd.f32 %v1191_v55, %v1024_v13 }
 0x220   : > { %v1599_v51 = vpop.f32.mrf.mxu1 }
 0x221   : > { %1266 = vst [vmem:[%s2077_s21 + $0x28] sm:$0xff] %v1250_v56  ;;  %v1255_v59 = vmax.f32 %v1239_v57, 0.0  ;;  %v1237_v60 = vadd.f32 %v2071_v21, %v1192_v58  ;;  %v1203_v61 = vadd.f32 %v1599_v51, %v1581_v14 }
 0x222   : > { %v1194_v62 = vpop.f32.mrf.mxu1 }
 0x223   : > { %1271 = vst [vmem:[%s2077_s21 + $0x50] sm:$0xff] %v1255_v59  ;;  %v1253_v63 = vmax.f32 %v1237_v60, 0.0  ;;  %v1240_v0 = vadd.f32 %v2071_v21, %v1203_v61  ;;  %v1195_v1 = vadd.f32 %v1194_v62, %v1027_v15 }
 0x224   : > { %v1602_v2 = vpop.f32.mrf.mxu1 }
 0x225   : > { %1269 = vst [vmem:[%s2077_s21 + $0x40] sm:$0xff] %v1253_v63  ;;  %v1256_v3 = vmax.f32 %v1240_v0, 0.0  ;;  %v1238_v4 = vadd.f32 %v2071_v21, %v1195_v1  ;;  %v1216_v5 = vadd.f32 %v1602_v2, %v2059_v16 }
 0x226   : > { %v1207_v6 = vpop.f32.mrf.mxu1 }
 0x227   : > { %1272 = vst [vmem:[%s2077_s21 + $0x58] sm:$0xff] %v1256_v3  ;;  %v1254_v7 = vmax.f32 %v1238_v4, 0.0  ;;  %v1243_v8 = vadd.f32 %v2071_v21, %v1216_v5  ;;  %v1208_v9 = vadd.f32 %v1207_v6, %v2061_v17 }
 0x228   : > { %v1603_v10 = vpop.f32.mrf.mxu1 }
 0x229   : > { %1270 = vst [vmem:[%s2077_s21 + $0x48] sm:$0xff] %v1254_v7  ;;  %v1259_v11 = vmax.f32 %v1243_v8, 0.0  ;;  %v1241_v12 = vadd.f32 %v2071_v21, %v1208_v9  ;;  %v1219_v13 = vadd.f32 %v1603_v10, %v2063_v18 }
 0x22a   : > { %v1210_v14 = vpop.f32.mrf.mxu1 }
 0x22b   : > { %1275 = vst [vmem:[%s2077_s21 + $0x70] sm:$0xff] %v1259_v11  ;;  %v1257_v15 = vmax.f32 %v1241_v12, 0.0  ;;  %v1244_v16 = vadd.f32 %v2071_v21, %v1219_v13  ;;  %v1211_v20 = vadd.f32 %v1210_v14, %v2065_v19 }
 0x22d   : > { %1273 = vst [vmem:[%s2077_s21 + $0x60] sm:$0xff] %v1257_v15  ;;  %v1260_v17 = vmax.f32 %v1244_v16, 0.0  ;;  %v1242_v22 = vadd.f32 %v2071_v21, %v1211_v20 }
 0x22f   : > { %1276 = vst [vmem:[%s2077_s21 + $0x78] sm:$0xff] %v1260_v17  ;;  %v1258_v18 = vmax.f32 %v1242_v22, 0.0 }
 0x231   : > { %1274 = vst [vmem:[%s2077_s21 + $0x68] sm:$0xff] %v1258_v18 }
 0x232   : > { %1728 = shalt.err (!%p1725_p5)
}
 0x233   : > { %s1729_s15 = scalar_lea.hbm %s2116_s17, 2048  ;;  %s1733_s21 = scalar_lea.hbm %s2176_s7, 4096 }
 0x234   : > { %p1730_p6 = scmp.ne.s32.totalorder %s2116_s17, %s1729_s15  ;;  %p1734_p10 = scmp.lt.s32.totalorder %s2116_s17, %s2176_s7 }
 0x235   : > { %p1735_p11 = scmp.lt.s32.totalorder %s1733_s21, %s1729_s15 }
 0x236   : > { %p1731_p7 = pnand %p1730_p6, %p1878_p4 }
 0x237   : > { %p1736_p12 = por %p1735_p11, %p1734_p10 }
 0x238   : > { %p1732_p9 = pneg %p1731_p7 }
 0x23a   : > { %p1737_p13 = pnand %p1736_p12, %p1732_p9 }
 0x23c   : > { %1740 = shalt.err (!%p1737_p13)
}
 0x23d   : > { %s1796_s30 = smov 128   ;;  %s1797_s8 = smov 8  }
 0x23e   : > { %1604 = dma.vmem_to_hbm [thread:$0]  (%p1878_p4), %s2118_s22, 2048, %s2116_s17, %s2124_s27, %s1796_s30, %s1796_s30, %s1797_s8  }
 0x23f PF: > { %p1610_p0 = scmp.ge.s32.totalorder %s1791_s29, 2  ;;  %s1306_s10 = sand.u32 1, %s1771_s24  }
 0x240   : > { %s1307_s12 = scalar_lea.sflag [#allocation4], %s1306_s10 }
 0x241   : > { %p1607_p1 = pnand %p1610_p0, %p1885_p8 }
 0x243   : > { %p1608_p2 = pneg %p1607_p1 }
 0x245   : > { %1766 = dma.done.wait (%p1608_p2), %s1307_s12, 2048  }
 0x246   : > { %1768 = vsyncadd (%p1608_p2), %s1307_s12, 4294965248  ;;  %s20_s29 = sadd.s32 1, %s1791_s29   ;;  %s2179_s24 = smov %s1775_s25 }
 0x247   : > { %p17_p3 = scmp.ge.s32.totalorder %s20_s29, 4   ;;  %s2180_s25 = smov %s1779_s26 }
 0x248   : > { %s2181_s26 = smov %s1891_s14  ;;  %s2182_s27 = smov %s1787_s28 }
 0x249   : > { %s2183_s28 = smov %s2185_s9  ;;  %19 = sbr.rel (!%p17_p3) target bundleno = 4 (0x4), region = 100 }
 0x24e   :  { %1312 = vsyncpa [#allocation4], 1 }
 0x24f   :  { %1314 = vsyncpa [#allocation4 + $0x1], 1 }

</bundles_post_ra>
